<compile_context>
chip_gen: v7x
topology: tpu7x:2x2x1
jax: 0.10.0
libtpu: 0.0.40
codegen_flags: <defaults>
</compile_context>

<pallas_src>
import jax
import jax.numpy as jnp
from jax import lax
from jax.experimental import pallas as pl
from jax.experimental.pallas import tpu as pltpu


_MIN_PALLAS_BYTES = 64 * 1024  # below this, launch overhead dominates -> plain JAX


def _flip_kernel(flags_ref, img_ref, out_ref):
    """flags_ref: SMEM (2,) int32 = [do_h, do_v].
    img_ref / out_ref: (tile_nc, h_blk, W) block in the image's native dtype."""
    do_h = flags_ref[0]
    do_v = flags_ref[1]
    tile_nc, h_blk, w = out_ref.shape
    x = img_ref[...]

    def hrev(v):
        # Lane (W) reversal: compile-time-constant reversed lane indices fed to
        # one gather.  The 2-D view is a pure major-dim collapse (guaranteed by
        # _choose_tiles), so no retiling copy is materialized.
        v2 = v.reshape(tile_nc * h_blk, w)
        idx = (w - 1) - lax.broadcasted_iota(jnp.int32, v2.shape, 1)
        v2 = jnp.take_along_axis(v2, idx, axis=1)
        return v2.reshape(tile_nc, h_blk, w)

    def vrev(v):
        # Sublane (row) reversal inside the block (the index_map already read
        # the H-blocks in reversed order).  Static slices + one concatenate:
        # vreg/XLU work only, followed by ONE full-block store — no per-row
        # masked vst.msk stores.
        if h_blk == 1:
            return v
        parts = [v[:, i:i + 1, :] for i in range(h_blk - 1, -1, -1)]
        return jnp.concatenate(parts, axis=1)

    @pl.when(jnp.logical_and(do_h == 0, do_v == 0))
    def _():
        out_ref[...] = x                      # common case: pure block copy

    @pl.when(jnp.logical_and(do_h != 0, do_v == 0))
    def _():
        out_ref[...] = hrev(x)

    @pl.when(jnp.logical_and(do_h == 0, do_v != 0))
    def _():
        out_ref[...] = vrev(x)

    @pl.when(jnp.logical_and(do_h != 0, do_v != 0))
    def _():
        out_ref[...] = vrev(hrev(x))


def _vmem_budget():
    """Generation-aware per-block budget and scoped-VMEM limit."""
    try:
        cap = int(getattr(pltpu.get_tpu_info(), "vmem_capacity_bytes",
                          64 * 1024 * 1024))
    except Exception:
        cap = 64 * 1024 * 1024            # conservative (covers v7x's 64 MiB)
    block_budget = min(4 * 1024 * 1024, cap // 32)   # ~4 MiB v5e/v6e, ~2 MiB v7x
    vmem_limit = min(cap // 2, 64 * 1024 * 1024)     # in+out double-buffer headroom
    return block_budget, vmem_limit


def _choose_tiles(nc, h, w, itemsize, block_budget):
    """Pick (tile_nc, h_blk).  h_blk bounded so the in-kernel row-reversal
    concat stays small; tile_nc fills the VMEM block budget."""
    if h <= 32:
        h_blk = h                        # full H is always a legal block dim
    else:                                # caller guarantees h % 8 == 0 here
        h_blk = 8
        for cand in (32, 16):
            if h % cand == 0:
                h_blk = cand
                break

    # Keep the in-kernel (tile_nc*h_blk, W) view a pure major-dim collapse for
    # every dtype (f32 needs h_blk%8, bf16 %16, int8/fp8 %32); otherwise take
    # one plane per block so the reshape is only a unit-dim squeeze.
    sublane_tile = {4: 8, 2: 16, 1: 32}.get(itemsize, 8)

    per_plane = h_blk * w * itemsize
    cap = max(1, block_budget // max(per_plane, 1))
    total_bytes = nc * h * w * itemsize
    if nc >= 2 and total_bytes > 8 * 1024 * 1024:
        # Only split for megacore (v7x) when the copy is actually DMA-bound.
        cap = min(cap, nc // 2)
    if h_blk % sublane_tile != 0:
        cap = 1

    tile_nc = 1
    for d in range(min(nc, cap), 0, -1):
        if nc % d == 0:
            tile_nc = d
            break
    return tile_nc, h_blk


def _apply_flip_pallas(img, flags):
    """img: (N, C, H, W); flags: (2,) int32 = [do_h, do_v]."""
    N, C, H, W = img.shape
    NC = N * C
    flat = img.reshape(NC, H, W)
    block_budget, vmem_limit = _vmem_budget()
    tile_nc, h_blk = _choose_tiles(NC, H, W, img.dtype.itemsize, block_budget)
    n_h = H // h_blk
    grid = (NC // tile_nc, n_h)

    def in_index(i, h, flags_ref):
        # Vertical flip reverses the order in which H-blocks are read.
        h_src = jnp.where(flags_ref[1] != 0, (n_h - 1) - h, h)
        return (i, h_src, 0)

    def out_index(i, h, flags_ref):
        return (i, h, 0)

    out = pl.pallas_call(
        _flip_kernel,
        out_shape=jax.ShapeDtypeStruct((NC, H, W), img.dtype),
        grid_spec=pltpu.PrefetchScalarGridSpec(
            num_scalar_prefetch=1,
            grid=grid,
            in_specs=[pl.BlockSpec((tile_nc, h_blk, W), in_index)],
            out_specs=pl.BlockSpec((tile_nc, h_blk, W), out_index),
        ),
        compiler_params=pltpu.CompilerParams(
            dimension_semantics=("parallel", "arbitrary"),
            vmem_limit_bytes=vmem_limit,
        ),
    )(flags, flat)
    return out.reshape(N, C, H, W)


def _flip_ref(img, do_h, do_v):
    """Plain-JAX flip (used as fallback and as the reference)."""
    img = jnp.where(do_h, img[..., ::-1], img)
    img = jnp.where(do_v, img[..., ::-1, :], img)
    return img


def _apply_flip(img, flags, do_h, do_v):
    N, C, H, W = img.shape
    total = N * C * H * W * img.dtype.itemsize
    lane_dense = (W % 128 == 0)
    h_tileable = (H <= 32) or (H % 8 == 0)
    if (not lane_dense) or (not h_tileable) or total < _MIN_PALLAS_BYTES:
        # Tiny or lane-sparse images: masked partial stores + per-launch
        # overhead would dominate a Pallas kernel; XLA fusion wins here.
        return _flip_ref(img, do_h, do_v)
    return _apply_flip_pallas(img, flags)


def random_flip_relative(key, img_small, img_large, p=0.5,
                         horizontal=True, vertical=True):
    """JAX/Pallas equivalent of RandomFlipRelative.forward."""
    kh, kv = jax.random.split(key)
    r_h = jax.random.uniform(kh, ())
    r_v = jax.random.uniform(kv, ())
    do_h = jnp.logical_and(p < r_h, jnp.bool_(horizontal))
    do_v = jnp.logical_and(p < r_v, jnp.bool_(vertical))
    flags = jnp.stack([do_h, do_v]).astype(jnp.int32)

    out_small = _apply_flip(img_small, flags, do_h, do_v)
    out_large = _apply_flip(img_large, flags, do_h, do_v)
    return out_small, out_large, do_h, do_v


if __name__ == "__main__":
    key = jax.random.PRNGKey(0)
    k_flip, k_s, k_l, k_ts, k_tl = jax.random.split(key, 5)

    # SR-style image pair; W is a multiple of 128 so the lane-dense Pallas
    # path is exercised (batch=2, channels=3).
    img_small = jax.random.normal(k_s, (2, 3, 64, 128), dtype=jnp.float32)
    img_large = jax.random.normal(k_l, (2, 3, 128, 256), dtype=jnp.float32)

    out_small, out_large, do_h, do_v = random_flip_relative(
        k_flip, img_small, img_large, p=0.5, horizontal=True, vertical=True)
    jax.block_until_ready((out_small, out_large))
    assert jnp.array_equal(out_small, _flip_ref(img_small, do_h, do_v))
    assert jnp.array_equal(out_large, _flip_ref(img_large, do_h, do_v))

    # Exercise all four flip combinations through the Pallas kernel itself.
    for dh in (0, 1):
        for dv in (0, 1):
            flags = jnp.array([dh, dv], dtype=jnp.int32)
            got = jax.block_until_ready(_apply_flip_pallas(img_small, flags))
            want = _flip_ref(img_small, bool(dh), bool(dv))
            assert jnp.array_equal(got, want), ("flip combo mismatch", dh, dv)

    # Tiny / lane-sparse images take the documented plain-JAX fallback path.
    tiny_s = jax.random.normal(k_ts, (2, 4, 16, 16), dtype=jnp.float32)
    tiny_l = jax.random.normal(k_tl, (2, 4, 32, 32), dtype=jnp.float32)
    ts, tl, dh2, dv2 = random_flip_relative(k_flip, tiny_s, tiny_l)
    jax.block_until_ready((ts, tl))
    assert jnp.array_equal(ts, _flip_ref(tiny_s, dh2, dv2))
    assert jnp.array_equal(tl, _flip_ref(tiny_l, dh2, dv2))

    print("KERNEL_OK")
</pallas_src>

<mosaic_0001>
module attributes {stable_mosaic.version = 11 : i64} {
  func.func @_flip_kernel(%arg0: i32, %arg1: i32, %arg2: memref<2xi32, #tpu.memory_space<smem>>, %arg3: memref<6x32x128xf32, #tpu.memory_space<vmem>>, %arg4: memref<6x32x128xf32, #tpu.memory_space<vmem>>) attributes {dimension_semantics = [#tpu.dimension_semantics<parallel>, #tpu.dimension_semantics<arbitrary>], iteration_bounds = array<i64: 1, 2>, scalar_prefetch = 1 : i64, scratch_operands = 0 : i64, tpu.core_type = #tpu.core_type<tc>, window_params = [{transform_indices = @transform_0, window_bounds = array<i64: 6, 32, 128>}, {transform_indices = @transform_1, window_bounds = array<i64: 6, 32, 128>}]} {
    %c0 = arith.constant 0 : index
    %0 = memref.load %arg2[%c0] : memref<2xi32, #tpu.memory_space<smem>>
    %c1 = arith.constant 1 : index
    %1 = memref.load %arg2[%c1] : memref<2xi32, #tpu.memory_space<smem>>
    %c0_0 = arith.constant 0 : index
    %c0_1 = arith.constant 0 : index
    %c0_2 = arith.constant 0 : index
    %2 = vector.load %arg3[%c0_0, %c0_1, %c0_2] : memref<6x32x128xf32, #tpu.memory_space<vmem>>, vector<6x32x128xf32>
    %c0_i32 = arith.constant 0 : i32
    %3 = arith.cmpi eq, %0, %c0_i32 : i32
    %c0_i32_3 = arith.constant 0 : i32
    %4 = arith.cmpi eq, %1, %c0_i32_3 : i32
    %5 = arith.andi %3, %4 : i1
    %6 = arith.extui %5 : i1 to i32
    %c0_i32_4 = arith.constant 0 : i32
    %7 = arith.cmpi ne, %6, %c0_i32_4 : i32
    scf.if %7 {
      %c0_14 = arith.constant 0 : index
      %c0_15 = arith.constant 0 : index
      %c0_16 = arith.constant 0 : index
      %23 = vector.load %arg4[%c0_14, %c0_15, %c0_16] : memref<6x32x128xf32, #tpu.memory_space<vmem>>, vector<6x32x128xf32>
      tpu.vector_store %arg4[%c0_14, %c0_15, %c0_16], %2 {strides = array<i32>} : memref<6x32x128xf32, #tpu.memory_space<vmem>>, vector<6x32x128xf32>,
    } else {
    }
    %c0_i32_5 = arith.constant 0 : i32
    %8 = arith.cmpi ne, %0, %c0_i32_5 : i32
    %c0_i32_6 = arith.constant 0 : i32
    %9 = arith.cmpi eq, %1, %c0_i32_6 : i32
    %10 = arith.andi %8, %9 : i1
    %11 = arith.extui %10 : i1 to i32
    %c0_i32_7 = arith.constant 0 : i32
    %12 = arith.cmpi ne, %11, %c0_i32_7 : i32
    scf.if %12 {
      %23 = vector.shape_cast %2 : vector<6x32x128xf32> to vector<192x128xf32>
      %24 = tpu.iota {dimensions = array<i32: 1>} : vector<192x128xi32>
      %c127_i32 = arith.constant 127 : i32
      %25 = vector.broadcast %c127_i32 : i32 to vector<192x128xi32>
      %26 = arith.subi %25, %24 : vector<192x128xi32>
      %c0_i32_14 = arith.constant 0 : i32
      %27 = vector.broadcast %c0_i32_14 : i32 to vector<192x128xi32>
      %28 = arith.cmpi slt, %26, %27 : vector<192x128xi32>
      %c128_i32 = arith.constant 128 : i32
      %29 = vector.broadcast %c128_i32 : i32 to vector<192x128xi32>
      %30 = arith.addi %26, %29 : vector<192x128xi32>
      %31 = arith.select %28, %30, %26 : vector<192x128xi1>, vector<192x128xi32>
      %32 = vector.shape_cast %31 : vector<192x128xi32> to vector<192x128x1xi32>
      %33 = vector.shape_cast %32 : vector<192x128x1xi32> to vector<192x128xi32>
      %34 = tpu.dynamic_gather %23[%33] in [1] : vector<192x128xf32>, vector<192x128xi32> -> vector<192x128xf32>
      %35 = vector.shape_cast %34 : vector<192x128xf32> to vector<6x32x128xf32>
      %c0_15 = arith.constant 0 : index
      %c0_16 = arith.constant 0 : index
      %c0_17 = arith.constant 0 : index
      %36 = vector.load %arg4[%c0_15, %c0_16, %c0_17] : memref<6x32x128xf32, #tpu.memory_space<vmem>>, vector<6x32x128xf32>
      tpu.vector_store %arg4[%c0_15, %c0_16, %c0_17], %35 {strides = array<i32>} : memref<6x32x128xf32, #tpu.memory_space<vmem>>, vector<6x32x128xf32>,
    } else {
    }
    %c0_i32_8 = arith.constant 0 : i32
    %13 = arith.cmpi eq, %0, %c0_i32_8 : i32
    %c0_i32_9 = arith.constant 0 : i32
    %14 = arith.cmpi ne, %1, %c0_i32_9 : i32
    %15 = arith.andi %13, %14 : i1
    %16 = arith.extui %15 : i1 to i32
    %c0_i32_10 = arith.constant 0 : i32
    %17 = arith.cmpi ne, %16, %c0_i32_10 : i32
    scf.if %17 {
      %23 = vector.extract_strided_slice %2 {offsets = [0, 31, 0], sizes = [6, 1, 128], strides = [1, 1, 1]} : vector<6x32x128xf32> to vector<6x1x128xf32>
      %24 = vector.extract_strided_slice %2 {offsets = [0, 30, 0], sizes = [6, 1, 128], strides = [1, 1, 1]} : vector<6x32x128xf32> to vector<6x1x128xf32>
      %25 = vector.extract_strided_slice %2 {offsets = [0, 29, 0], sizes = [6, 1, 128], strides = [1, 1, 1]} : vector<6x32x128xf32> to vector<6x1x128xf32>
      %26 = vector.extract_strided_slice %2 {offsets = [0, 28, 0], sizes = [6, 1, 128], strides = [1, 1, 1]} : vector<6x32x128xf32> to vector<6x1x128xf32>
      %27 = vector.extract_strided_slice %2 {offsets = [0, 27, 0], sizes = [6, 1, 128], strides = [1, 1, 1]} : vector<6x32x128xf32> to vector<6x1x128xf32>
      %28 = vector.extract_strided_slice %2 {offsets = [0, 26, 0], sizes = [6, 1, 128], strides = [1, 1, 1]} : vector<6x32x128xf32> to vector<6x1x128xf32>
      %29 = vector.extract_strided_slice %2 {offsets = [0, 25, 0], sizes = [6, 1, 128], strides = [1, 1, 1]} : vector<6x32x128xf32> to vector<6x1x128xf32>
      %30 = vector.extract_strided_slice %2 {offsets = [0, 24, 0], sizes = [6, 1, 128], strides = [1, 1, 1]} : vector<6x32x128xf32> to vector<6x1x128xf32>
      %31 = vector.extract_strided_slice %2 {offsets = [0, 23, 0], sizes = [6, 1, 128], strides = [1, 1, 1]} : vector<6x32x128xf32> to vector<6x1x128xf32>
      %32 = vector.extract_strided_slice %2 {offsets = [0, 22, 0], sizes = [6, 1, 128], strides = [1, 1, 1]} : vector<6x32x128xf32> to vector<6x1x128xf32>
      %33 = vector.extract_strided_slice %2 {offsets = [0, 21, 0], sizes = [6, 1, 128], strides = [1, 1, 1]} : vector<6x32x128xf32> to vector<6x1x128xf32>
      %34 = vector.extract_strided_slice %2 {offsets = [0, 20, 0], sizes = [6, 1, 128], strides = [1, 1, 1]} : vector<6x32x128xf32> to vector<6x1x128xf32>
      %35 = vector.extract_strided_slice %2 {offsets = [0, 19, 0], sizes = [6, 1, 128], strides = [1, 1, 1]} : vector<6x32x128xf32> to vector<6x1x128xf32>
      %36 = vector.extract_strided_slice %2 {offsets = [0, 18, 0], sizes = [6, 1, 128], strides = [1, 1, 1]} : vector<6x32x128xf32> to vector<6x1x128xf32>
      %37 = vector.extract_strided_slice %2 {offsets = [0, 17, 0], sizes = [6, 1, 128], strides = [1, 1, 1]} : vector<6x32x128xf32> to vector<6x1x128xf32>
      %38 = vector.extract_strided_slice %2 {offsets = [0, 16, 0], sizes = [6, 1, 128], strides = [1, 1, 1]} : vector<6x32x128xf32> to vector<6x1x128xf32>
      %39 = vector.extract_strided_slice %2 {offsets = [0, 15, 0], sizes = [6, 1, 128], strides = [1, 1, 1]} : vector<6x32x128xf32> to vector<6x1x128xf32>
      %40 = vector.extract_strided_slice %2 {offsets = [0, 14, 0], sizes = [6, 1, 128], strides = [1, 1, 1]} : vector<6x32x128xf32> to vector<6x1x128xf32>
      %41 = vector.extract_strided_slice %2 {offsets = [0, 13, 0], sizes = [6, 1, 128], strides = [1, 1, 1]} : vector<6x32x128xf32> to vector<6x1x128xf32>
      %42 = vector.extract_strided_slice %2 {offsets = [0, 12, 0], sizes = [6, 1, 128], strides = [1, 1, 1]} : vector<6x32x128xf32> to vector<6x1x128xf32>
      %43 = vector.extract_strided_slice %2 {offsets = [0, 11, 0], sizes = [6, 1, 128], strides = [1, 1, 1]} : vector<6x32x128xf32> to vector<6x1x128xf32>
      %44 = vector.extract_strided_slice %2 {offsets = [0, 10, 0], sizes = [6, 1, 128], strides = [1, 1, 1]} : vector<6x32x128xf32> to vector<6x1x128xf32>
      %45 = vector.extract_strided_slice %2 {offsets = [0, 9, 0], sizes = [6, 1, 128], strides = [1, 1, 1]} : vector<6x32x128xf32> to vector<6x1x128xf32>
      %46 = vector.extract_strided_slice %2 {offsets = [0, 8, 0], sizes = [6, 1, 128], strides = [1, 1, 1]} : vector<6x32x128xf32> to vector<6x1x128xf32>
      %47 = vector.extract_strided_slice %2 {offsets = [0, 7, 0], sizes = [6, 1, 128], strides = [1, 1, 1]} : vector<6x32x128xf32> to vector<6x1x128xf32>
      %48 = vector.extract_strided_slice %2 {offsets = [0, 6, 0], sizes = [6, 1, 128], strides = [1, 1, 1]} : vector<6x32x128xf32> to vector<6x1x128xf32>
      %49 = vector.extract_strided_slice %2 {offsets = [0, 5, 0], sizes = [6, 1, 128], strides = [1, 1, 1]} : vector<6x32x128xf32> to vector<6x1x128xf32>
      %50 = vector.extract_strided_slice %2 {offsets = [0, 4, 0], sizes = [6, 1, 128], strides = [1, 1, 1]} : vector<6x32x128xf32> to vector<6x1x128xf32>
      %51 = vector.extract_strided_slice %2 {offsets = [0, 3, 0], sizes = [6, 1, 128], strides = [1, 1, 1]} : vector<6x32x128xf32> to vector<6x1x128xf32>
      %52 = vector.extract_strided_slice %2 {offsets = [0, 2, 0], sizes = [6, 1, 128], strides = [1, 1, 1]} : vector<6x32x128xf32> to vector<6x1x128xf32>
      %53 = vector.extract_strided_slice %2 {offsets = [0, 1, 0], sizes = [6, 1, 128], strides = [1, 1, 1]} : vector<6x32x128xf32> to vector<6x1x128xf32>
      %54 = vector.extract_strided_slice %2 {offsets = [0, 0, 0], sizes = [6, 1, 128], strides = [1, 1, 1]} : vector<6x32x128xf32> to vector<6x1x128xf32>
      %55 = tpu.concatenate %23, %24, %25, %26, %27, %28, %29, %30, %31, %32, %33, %34, %35, %36, %37, %38 in 1 : vector<6x1x128xf32>, vector<6x1x128xf32>, vector<6x1x128xf32>, vector<6x1x128xf32>, vector<6x1x128xf32>, vector<6x1x128xf32>, vector<6x1x128xf32>, vector<6x1x128xf32>, vector<6x1x128xf32>, vector<6x1x128xf32>, vector<6x1x128xf32>, vector<6x1x128xf32>, vector<6x1x128xf32>, vector<6x1x128xf32>, vector<6x1x128xf32>, vector<6x1x128xf32> -> vector<6x16x128xf32>
      %56 = tpu.concatenate %39, %40, %41, %42, %43, %44, %45, %46, %47, %48, %49, %50, %51, %52, %53, %54 in 1 : vector<6x1x128xf32>, vector<6x1x128xf32>, vector<6x1x128xf32>, vector<6x1x128xf32>, vector<6x1x128xf32>, vector<6x1x128xf32>, vector<6x1x128xf32>, vector<6x1x128xf32>, vector<6x1x128xf32>, vector<6x1x128xf32>, vector<6x1x128xf32>, vector<6x1x128xf32>, vector<6x1x128xf32>, vector<6x1x128xf32>, vector<6x1x128xf32>, vector<6x1x128xf32> -> vector<6x16x128xf32>
      %57 = tpu.concatenate %55, %56 in 1 : vector<6x16x128xf32>, vector<6x16x128xf32> -> vector<6x32x128xf32>
      %c0_14 = arith.constant 0 : index
      %c0_15 = arith.constant 0 : index
      %c0_16 = arith.constant 0 : index
      %58 = vector.load %arg4[%c0_14, %c0_15, %c0_16] : memref<6x32x128xf32, #tpu.memory_space<vmem>>, vector<6x32x128xf32>
      tpu.vector_store %arg4[%c0_14, %c0_15, %c0_16], %57 {strides = array<i32>} : memref<6x32x128xf32, #tpu.memory_space<vmem>>, vector<6x32x128xf32>,
    } else {
    }
    %c0_i32_11 = arith.constant 0 : i32
    %18 = arith.cmpi ne, %0, %c0_i32_11 : i32
    %c0_i32_12 = arith.constant 0 : i32
    %19 = arith.cmpi ne, %1, %c0_i32_12 : i32
    %20 = arith.andi %18, %19 : i1
    %21 = arith.extui %20 : i1 to i32
    %c0_i32_13 = arith.constant 0 : i32
    %22 = arith.cmpi ne, %21, %c0_i32_13 : i32
    scf.if %22 {
      %23 = vector.shape_cast %2 : vector<6x32x128xf32> to vector<192x128xf32>
      %24 = tpu.iota {dimensions = array<i32: 1>} : vector<192x128xi32>
      %c127_i32 = arith.constant 127 : i32
      %25 = vector.broadcast %c127_i32 : i32 to vector<192x128xi32>
      %26 = arith.subi %25, %24 : vector<192x128xi32>
      %c0_i32_14 = arith.constant 0 : i32
      %27 = vector.broadcast %c0_i32_14 : i32 to vector<192x128xi32>
      %28 = arith.cmpi slt, %26, %27 : vector<192x128xi32>
      %c128_i32 = arith.constant 128 : i32
      %29 = vector.broadcast %c128_i32 : i32 to vector<192x128xi32>
      %30 = arith.addi %26, %29 : vector<192x128xi32>
      %31 = arith.select %28, %30, %26 : vector<192x128xi1>, vector<192x128xi32>
      %32 = vector.shape_cast %31 : vector<192x128xi32> to vector<192x128x1xi32>
      %33 = vector.shape_cast %32 : vector<192x128x1xi32> to vector<192x128xi32>
      %34 = tpu.dynamic_gather %23[%33] in [1] : vector<192x128xf32>, vector<192x128xi32> -> vector<192x128xf32>
      %35 = vector.shape_cast %34 : vector<192x128xf32> to vector<6x32x128xf32>
      %36 = vector.extract_strided_slice %35 {offsets = [0, 31, 0], sizes = [6, 1, 128], strides = [1, 1, 1]} : vector<6x32x128xf32> to vector<6x1x128xf32>
      %37 = vector.extract_strided_slice %35 {offsets = [0, 30, 0], sizes = [6, 1, 128], strides = [1, 1, 1]} : vector<6x32x128xf32> to vector<6x1x128xf32>
      %38 = vector.extract_strided_slice %35 {offsets = [0, 29, 0], sizes = [6, 1, 128], strides = [1, 1, 1]} : vector<6x32x128xf32> to vector<6x1x128xf32>
      %39 = vector.extract_strided_slice %35 {offsets = [0, 28, 0], sizes = [6, 1, 128], strides = [1, 1, 1]} : vector<6x32x128xf32> to vector<6x1x128xf32>
      %40 = vector.extract_strided_slice %35 {offsets = [0, 27, 0], sizes = [6, 1, 128], strides = [1, 1, 1]} : vector<6x32x128xf32> to vector<6x1x128xf32>
      %41 = vector.extract_strided_slice %35 {offsets = [0, 26, 0], sizes = [6, 1, 128], strides = [1, 1, 1]} : vector<6x32x128xf32> to vector<6x1x128xf32>
      %42 = vector.extract_strided_slice %35 {offsets = [0, 25, 0], sizes = [6, 1, 128], strides = [1, 1, 1]} : vector<6x32x128xf32> to vector<6x1x128xf32>
      %43 = vector.extract_strided_slice %35 {offsets = [0, 24, 0], sizes = [6, 1, 128], strides = [1, 1, 1]} : vector<6x32x128xf32> to vector<6x1x128xf32>
      %44 = vector.extract_strided_slice %35 {offsets = [0, 23, 0], sizes = [6, 1, 128], strides = [1, 1, 1]} : vector<6x32x128xf32> to vector<6x1x128xf32>
      %45 = vector.extract_strided_slice %35 {offsets = [0, 22, 0], sizes = [6, 1, 128], strides = [1, 1, 1]} : vector<6x32x128xf32> to vector<6x1x128xf32>
      %46 = vector.extract_strided_slice %35 {offsets = [0, 21, 0], sizes = [6, 1, 128], strides = [1, 1, 1]} : vector<6x32x128xf32> to vector<6x1x128xf32>
      %47 = vector.extract_strided_slice %35 {offsets = [0, 20, 0], sizes = [6, 1, 128], strides = [1, 1, 1]} : vector<6x32x128xf32> to vector<6x1x128xf32>
      %48 = vector.extract_strided_slice %35 {offsets = [0, 19, 0], sizes = [6, 1, 128], strides = [1, 1, 1]} : vector<6x32x128xf32> to vector<6x1x128xf32>
      %49 = vector.extract_strided_slice %35 {offsets = [0, 18, 0], sizes = [6, 1, 128], strides = [1, 1, 1]} : vector<6x32x128xf32> to vector<6x1x128xf32>
      %50 = vector.extract_strided_slice %35 {offsets = [0, 17, 0], sizes = [6, 1, 128], strides = [1, 1, 1]} : vector<6x32x128xf32> to vector<6x1x128xf32>
      %51 = vector.extract_strided_slice %35 {offsets = [0, 16, 0], sizes = [6, 1, 128], strides = [1, 1, 1]} : vector<6x32x128xf32> to vector<6x1x128xf32>
      %52 = vector.extract_strided_slice %35 {offsets = [0, 15, 0], sizes = [6, 1, 128], strides = [1, 1, 1]} : vector<6x32x128xf32> to vector<6x1x128xf32>
      %53 = vector.extract_strided_slice %35 {offsets = [0, 14, 0], sizes = [6, 1, 128], strides = [1, 1, 1]} : vector<6x32x128xf32> to vector<6x1x128xf32>
      %54 = vector.extract_strided_slice %35 {offsets = [0, 13, 0], sizes = [6, 1, 128], strides = [1, 1, 1]} : vector<6x32x128xf32> to vector<6x1x128xf32>
      %55 = vector.extract_strided_slice %35 {offsets = [0, 12, 0], sizes = [6, 1, 128], strides = [1, 1, 1]} : vector<6x32x128xf32> to vector<6x1x128xf32>
      %56 = vector.extract_strided_slice %35 {offsets = [0, 11, 0], sizes = [6, 1, 128], strides = [1, 1, 1]} : vector<6x32x128xf32> to vector<6x1x128xf32>
      %57 = vector.extract_strided_slice %35 {offsets = [0, 10, 0], sizes = [6, 1, 128], strides = [1, 1, 1]} : vector<6x32x128xf32> to vector<6x1x128xf32>
      %58 = vector.extract_strided_slice %35 {offsets = [0, 9, 0], sizes = [6, 1, 128], strides = [1, 1, 1]} : vector<6x32x128xf32> to vector<6x1x128xf32>
      %59 = vector.extract_strided_slice %35 {offsets = [0, 8, 0], sizes = [6, 1, 128], strides = [1, 1, 1]} : vector<6x32x128xf32> to vector<6x1x128xf32>
      %60 = vector.extract_strided_slice %35 {offsets = [0, 7, 0], sizes = [6, 1, 128], strides = [1, 1, 1]} : vector<6x32x128xf32> to vector<6x1x128xf32>
      %61 = vector.extract_strided_slice %35 {offsets = [0, 6, 0], sizes = [6, 1, 128], strides = [1, 1, 1]} : vector<6x32x128xf32> to vector<6x1x128xf32>
      %62 = vector.extract_strided_slice %35 {offsets = [0, 5, 0], sizes = [6, 1, 128], strides = [1, 1, 1]} : vector<6x32x128xf32> to vector<6x1x128xf32>
      %63 = vector.extract_strided_slice %35 {offsets = [0, 4, 0], sizes = [6, 1, 128], strides = [1, 1, 1]} : vector<6x32x128xf32> to vector<6x1x128xf32>
      %64 = vector.extract_strided_slice %35 {offsets = [0, 3, 0], sizes = [6, 1, 128], strides = [1, 1, 1]} : vector<6x32x128xf32> to vector<6x1x128xf32>
      %65 = vector.extract_strided_slice %35 {offsets = [0, 2, 0], sizes = [6, 1, 128], strides = [1, 1, 1]} : vector<6x32x128xf32> to vector<6x1x128xf32>
      %66 = vector.extract_strided_slice %35 {offsets = [0, 1, 0], sizes = [6, 1, 128], strides = [1, 1, 1]} : vector<6x32x128xf32> to vector<6x1x128xf32>
      %67 = vector.extract_strided_slice %35 {offsets = [0, 0, 0], sizes = [6, 1, 128], strides = [1, 1, 1]} : vector<6x32x128xf32> to vector<6x1x128xf32>
      %68 = tpu.concatenate %36, %37, %38, %39, %40, %41, %42, %43, %44, %45, %46, %47, %48, %49, %50, %51 in 1 : vector<6x1x128xf32>, vector<6x1x128xf32>, vector<6x1x128xf32>, vector<6x1x128xf32>, vector<6x1x128xf32>, vector<6x1x128xf32>, vector<6x1x128xf32>, vector<6x1x128xf32>, vector<6x1x128xf32>, vector<6x1x128xf32>, vector<6x1x128xf32>, vector<6x1x128xf32>, vector<6x1x128xf32>, vector<6x1x128xf32>, vector<6x1x128xf32>, vector<6x1x128xf32> -> vector<6x16x128xf32>
      %69 = tpu.concatenate %52, %53, %54, %55, %56, %57, %58, %59, %60, %61, %62, %63, %64, %65, %66, %67 in 1 : vector<6x1x128xf32>, vector<6x1x128xf32>, vector<6x1x128xf32>, vector<6x1x128xf32>, vector<6x1x128xf32>, vector<6x1x128xf32>, vector<6x1x128xf32>, vector<6x1x128xf32>, vector<6x1x128xf32>, vector<6x1x128xf32>, vector<6x1x128xf32>, vector<6x1x128xf32>, vector<6x1x128xf32>, vector<6x1x128xf32>, vector<6x1x128xf32>, vector<6x1x128xf32> -> vector<6x16x128xf32>
      %70 = tpu.concatenate %68, %69 in 1 : vector<6x16x128xf32>, vector<6x16x128xf32> -> vector<6x32x128xf32>
      %c0_15 = arith.constant 0 : index
      %c0_16 = arith.constant 0 : index
      %c0_17 = arith.constant 0 : index
      %71 = vector.load %arg4[%c0_15, %c0_16, %c0_17] : memref<6x32x128xf32, #tpu.memory_space<vmem>>, vector<6x32x128xf32>
      tpu.vector_store %arg4[%c0_15, %c0_16, %c0_17], %70 {strides = array<i32>} : memref<6x32x128xf32, #tpu.memory_space<vmem>>, vector<6x32x128xf32>,
    } else {
    }
    return
  }
  func.func @transform_0(%arg0: i32, %arg1: i32, %arg2: memref<2xi32, #tpu.memory_space<smem>>) -> (i32, i32, i32) {
    %c1 = arith.constant 1 : index
    %0 = memref.load %arg2[%c1] : memref<2xi32, #tpu.memory_space<smem>>
    %c0_i32 = arith.constant 0 : i32
    %1 = arith.cmpi ne, %0, %c0_i32 : i32
    %c1_i32 = arith.constant 1 : i32
    %2 = arith.subi %c1_i32, %arg1 : i32
    %3 = arith.select %1, %2, %arg1 : i32
    %c0_i32_0 = arith.constant 0 : i32
    %c0_i32_1 = arith.constant 0 : i32
    return %arg0, %3, %c0_i32_0 : i32, i32, i32
  }
  func.func @transform_1(%arg0: i32, %arg1: i32, %arg2: memref<2xi32, #tpu.memory_space<smem>>) -> (i32, i32, i32) {
    %c0_i32 = arith.constant 0 : i32
    %c0_i32_0 = arith.constant 0 : i32
    return %arg0, %arg1, %c0_i32 : i32, i32, i32
  }
}

</mosaic_0001>

<bundles_post_ra>
// kernel: tpu_custom_call.1
= control target key start
LH: loop header
LB: loop body
LE: loop exit
PB: predicated region body
PF: predicated region fallthrough
CT: control target
= control target key end

     0   :  { %s2639_s0 = inlined_call_operand.hbm [shape: s32[2], index: 0, kind: input, shape index: {}]   ;;  %s2640_s1 = inlined_call_operand.hbm [shape: f32[6,64,128], index: 1, kind: input, shape index: {}]   ;;  %s2641_s2 = inlined_call_operand.hbm [shape: f32[6,64,128], index: 2, kind: output, shape index: {}]  }
   0x1   :  { %s1551_s11 = scalar_lea.hbm %s2639_s0, 16 }
   0x2   :  { %p1552_p0 = scmp.ne.s32.totalorder %s2639_s0, %s1551_s11  ;;  %p1555_p1 = scmp.lt.u32.totalorder %s1551_s11, %s2639_s0 }
   0x4   :  { %p1557_p2 = pnand %p1555_p1, %p1552_p0 }
   0x6   :  { %1560 = shalt.err (!%p1557_p2)  }
   0x7   :  { %s1643_s16 = smov [#allocation3]  }
   0x8   :  { %8 = dma.hbm_to_smem %s2639_s0, 16, %s1643_s16, [#allocation2] }
   0x9   :  { %1597 = dma.done.wait [#allocation2], 16 }
   0xa   :  { %1598 = vsyncadd [#allocation2], 4294967280 }
   0xb   :  { %10 = sfence }
   0xc   :  { %11 = vsyncpa [#allocation5], 0 }
   0xd   :  { %13 = vsyncpa [#allocation5 + $0x1], 0 }
   0xe   :  { %14 = vsyncpa [#allocation6], 0 }
   0xf   :  { %16 = vsyncpa [#allocation6 + $0x1], 0  ;;  %s1684_s19 = smov 0   ;;  %s1686_s20 = smov 0  }
  0x10   :  { %s1688_s21 = smov 0   ;;  %s1690_s22 = smov 0  }
  0x11   :  { %s1692_s23 = smov 0   ;;  %s1694_s24 = smov 0  }
  0x12   :  { %s1696_s0 = smov 0   ;;  %s1698_s25 = smov 0  }
  0x13   :  { %s1700_s26 = smov 0  }
  0x14 LB: > { %s1417_s27 = sadd.s32 4294967295, %s1641_s26   ;;  %s1418_s28 = sadd.s32 4294967294, %s1641_s26   ;;  %s1641_s26 = sphi %s1700_s26, %s22_s26   ;;  %s1637_s25 = sphi %s1698_s25, %s2657_s25   ;;  %s1633_s0 = sphi %s1696_s0, %s2656_s0   ;;  %s1629_s24 = sphi %s1694_s24, %s2655_s24   ;;  %s1625_s23 = sphi %s1692_s23, %s2654_s23   ;;  %s1621_s22 = sphi %s1690_s22, %s2653_s22   ;;  %s1617_s21 = sphi %s1688_s21, %s2652_s21   ;;  %s1613_s20 = sphi %s1686_s20, %s2651_s20   ;;  %s1609_s19 = sphi %s1684_s19, %s2650_s19  }
  0x15   : > { %s31_s29 = sadd.s32 1, %s1637_s25  ;;  %s1419_s30 = sld [smem:[#allocation3 + $0x1]] }
  0x16   : > { %p32_p3 = scmp.ge.s32.totalorder %s31_s29, 2  ;;  %s40_s3 = ssub.s32 1, %s1637_s25 }
  0x17   : > { %s51_s4 = sadd.s32 1, %s1629_s24  ;;  %p58_p4 = scmp.ne.s32.totalorder %s1629_s24, %s1625_s23 }
  0x18   : > { %s2659_s29 = smov (%p32_p3, %s31_s29), 0  ;;  %p59_p5 = scmp.eq.s32.totalorder %s1641_s26, 0 }
  0x19   : > { %2643 = sst [smem:[#allocation16_spill]] %s2659_s29  ;;  %p64_p6 = scmp.ne.s32.totalorder %s1625_s23, %s1621_s22 }
  0x1a   : > { %s44_s5 = ssub.s32 1, %s2659_s29  ;;  %p65_p7 = scmp.eq.s32.totalorder %s1417_s27, 0 }
  0x1b   : > { %p39_p8 = scmp.ne.s32.totalorder %s1419_s30, 0  ;;  %p1739_p9 = por %p59_p5, %p58_p4 }
  0x1c   : > { %p1743_p10 = por %p65_p7, %p64_p6  ;;  %s75_s8 = ssub.s32 %s1637_s25, %s2659_s29 }
  0x1d   : > { %s41_s9 = scalar_select %p39_p8, %s40_s3, %s1637_s25 }
  0x1e   : > { %s2661_s5 = smov (!%p39_p8, %s44_s5), %s2659_s29  ;;  %p77_p11 = scmp.eq.s32.totalorder %s75_s8, 0 }
  0x1f   : > { %s79_s10 = sadd.s32 1, %s1617_s21  ;;  %s47_s11 = ssub.s32 %s41_s9, %s2661_s5 }
  0x20   : > { %p89_p12 = scmp.ne.s32.totalorder %s1617_s21, %s1613_s20  ;;  %p49_p13 = scmp.eq.s32.totalorder %s47_s11, 0 }
  0x21   : > { %p90_p0 = scmp.eq.s32.totalorder %s1417_s27, 1  ;;  %p95_p2 = scmp.ne.s32.totalorder %s1613_s20, %s1609_s19 }
  0x22   : > { %s1757_s12 = scalar_select %p77_p11, %s1617_s21, %s79_s10  }
  0x23   : > { %s1760_s13 = scalar_select %p49_p13, %s1629_s24, %s51_s4  }
  0x24   : > { %p1762_p1 = por %p90_p0, %p89_p12  ;;  %p96_p3 = scmp.eq.s32.totalorder %s1418_s28, 1 }
  0x25   : > { %p1422_p5 = scmp.ge.s32.totalorder %s1641_s26, 2 }
  0x26   : > { %p1768_p4 = por %p96_p3, %p95_p2 }
  0x27   : > { %112 = sbr.rel (%p1422_p5) target bundleno = 61 (0x3d), region = 16 }
  0x2e   : > { %s116_s16 = sand.u32 1, %s1629_s24   ;;  %s1423_s17 = sld [smem:[#allocation3 + $0x1]] }
  0x2f   : > { %s1436_s18 = smul.u32 192, %s116_s16  ;;  %s1644_s4 = smov 1024  }
  0x30   : > { %s1439_s22 = scalar_select %p1739_p9, [#allocation0], [#allocation12] }
  0x31   : > { %s120_s28 = scalar_lea.vmem [#allocation4], %s1436_s18  ;;  %1440 = sst [smem:[#allocation9]] (%p1739_p9), %s1644_s4 }
  0x32   : > { %s138_s27 = sld [smem:[%s1439_s22]]   ;;  %s146_s30 = sshll.u32 %s120_s28, 4  ;;  %s147_s30 = int_to_ptr.vmem [resolvable:$true] %s146_s30 }
  0x33   : > { %s1645_s5 = smov 512   ;;  %s1646_s8 = smov 4  }
  0x34   : > { %p122_p6 = scmp.ne.s32.totalorder %s1423_s17, 0  ;;  %1441 = sst [smem:[#allocation9 + $0x1]] (%p1739_p9), %s1645_s5 }
  0x35   : > { %1442 = sst [smem:[#allocation9 + $0x2]] (%p1739_p9), %s1646_s8  ;;  %s1647_s29 = smov 128  }
  0x36   : > { %s2663_s3 = smov (!%p122_p6, %s40_s3), %s1637_s25  ;;  %1443 = sst [smem:[#allocation9 + $0x3]] (%p1739_p9), %s1647_s29 }
  0x37   : > { %s1434_s9 = sshll.u32 %s2663_s3, 9  ;;  %1444 = sst [smem:[#allocation9 + $0x4]] (%p1739_p9), %s1647_s29 }
  0x38   : > { %s1426_s10 = sshll.u32 %s138_s27, 26  ;;  %s133_s22 = scalar_lea.hbm %s2640_s1, %s1434_s9 }
  0x39   : > { %s1427_s28 = sadd.s32 134217728, %s1426_s10  ;;  %s1648_s17 = smov 8  }
  0x3a   : > { %1445 = sst [smem:[#allocation9 + $0x5]] (%p1739_p9), %s1648_s17  ;;  %s117_s4 = scalar_lea.sflag [#allocation5], %s116_s16 }
  0x3b   : > { %s1649_s5 = smov [#allocation8]  }
  0x3c   : > { %1446 = dma.general (%p1739_p9), %s133_s22, 3072, %s147_s30, %s117_s4, %s1649_s5, [#allocation9], %s1427_s28, 0  }
  0x3d PF: > { %p1428_p7 = scmp.ge.s32.totalorder %s1641_s26, 1  ;;  %p167_p8 = scmp.lt.s32.totalorder %s1641_s26, 3 }
  0x3f   : > { %p168_p11 = pnand %p1428_p7, %p167_p8 }
  0x40   : > { %s173_s3 = sand.u32 (!%p168_p11), 1, %s1625_s23  }
  0x41   : > { %171 = sbr.rel (%p168_p11) target bundleno = 577 (0x241), region = 24  ;;  %s174_s8 = scalar_lea.sflag (!%p168_p11), [#allocation5], %s173_s3 }
  0x42   : > { %s1437_s27 = smul.u32 (!%p168_p11), 192, %s173_s3 }
  0x44   : > { %s1801_s29 = scalar_lea.vmem (!%p168_p11), [#allocation4], %s1437_s27 }
  0x48   : > { %1600 = dma.done.wait (%p1743_p10), %s174_s8, 3072  }
  0x49   : > { %1602 = vsyncadd (%p1743_p10), %s174_s8, 4294964224  ;;  %s193_s6 = sand.u32 1, %s1613_s20   ;;  %s1808_s16 = sld [smem:[#allocation3]]  ;;  %v1815_v0 = vld [vmem:[%s1801_s29] sm:$0xff]  ;;  %v1818_v1 = vld [vmem:[%s1801_s29 + $0x8] sm:$0xff] }
  0x4a   : > { %s1810_s7 = sld [smem:[#allocation3 + $0x1]]  ;;  %s1438_s30 = smul.u32 192, %s193_s6  ;;  %v1821_v2 = vld [vmem:[%s1801_s29 + $0x10] sm:$0xff]  ;;  %v1826_v3 = vld [vmem:[%s1801_s29 + $0x18] sm:$0xff]  ;;  %v1829_v4 = vld [vmem:[%s1801_s29 + $0x20] sm:$0xff] }
  0x4b   : > { %v1832_v5 = vld [vmem:[%s1801_s29 + $0x28] sm:$0xff]  ;;  %v1835_v6 = vld [vmem:[%s1801_s29 + $0x30] sm:$0xff]  ;;  %v1838_v7 = vld [vmem:[%s1801_s29 + $0x38] sm:$0xff] }
  0x4c   : > { %v1841_v8 = vld [vmem:[%s1801_s29 + $0x40] sm:$0xff]  ;;  %v1852_v9 = vld [vmem:[%s1801_s29 + $0x48] sm:$0xff]  ;;  %v1855_v10 = vld [vmem:[%s1801_s29 + $0x50] sm:$0xff]  ;;  %s1896_s10 = scalar_lea.vmem [#allocation7], %s1438_s30 }
  0x4d   : > { %v1858_v11 = vld [vmem:[%s1801_s29 + $0x58] sm:$0xff]  ;;  %v1861_v12 = vld [vmem:[%s1801_s29 + $0x60] sm:$0xff]  ;;  %v1864_v13 = vld [vmem:[%s1801_s29 + $0x68] sm:$0xff] }
  0x4e   : > { %v1867_v14 = vld [vmem:[%s1801_s29 + $0x70] sm:$0xff]  ;;  %v1870_v15 = vld [vmem:[%s1801_s29 + $0x78] sm:$0xff]  ;;  %v1873_v16 = vld [vmem:[%s1801_s29 + $0x80] sm:$0xff] }
  0x4f   : > { %p230_p9 = scmp.eq.s32.totalorder %s1808_s16, 0  ;;  %v1876_v17 = vld [vmem:[%s1801_s29 + $0x88] sm:$0xff]  ;;  %v1879_v18 = vld [vmem:[%s1801_s29 + $0x90] sm:$0xff]  ;;  %v1882_v19 = vld [vmem:[%s1801_s29 + $0x98] sm:$0xff] }
  0x50   : > { %p231_p10 = scmp.eq.s32.totalorder %s1810_s7, 0  ;;  %v1885_v20 = vld [vmem:[%s1801_s29 + $0xa0] sm:$0xff]  ;;  %v1888_v21 = vld [vmem:[%s1801_s29 + $0xa8] sm:$0xff]  ;;  %v1891_v22 = vld [vmem:[%s1801_s29 + $0xb0] sm:$0xff] }
  0x51   : > { %v1894_v23 = vld [vmem:[%s1801_s29 + $0xb8] sm:$0xff] }
  0x52   : > { %p1847_p12 = pnand %p231_p10, %p230_p9 }
  0x53   : > { %236 = vst [vmem:[%s1896_s10] sm:$0xff] (!%p1847_p12), %v1815_v0  ;;  %237 = vst [vmem:[%s1896_s10 + $0x8] sm:$0xff] (!%p1847_p12), %v1818_v1 }
  0x54   : > { %235 = sbr.rel (%p1847_p12) target bundleno = 95 (0x5f), region = 32  ;;  %238 = vst [vmem:[%s1896_s10 + $0x10] sm:$0xff] (!%p1847_p12), %v1821_v2  ;;  %239 = vst [vmem:[%s1896_s10 + $0x18] sm:$0xff] (!%p1847_p12), %v1826_v3 }
  0x55   : > { %240 = vst [vmem:[%s1896_s10 + $0x20] sm:$0xff] (!%p1847_p12), %v1829_v4  ;;  %241 = vst [vmem:[%s1896_s10 + $0x28] sm:$0xff] (!%p1847_p12), %v1832_v5 }
  0x56   : > { %242 = vst [vmem:[%s1896_s10 + $0x30] sm:$0xff] (!%p1847_p12), %v1835_v6  ;;  %243 = vst [vmem:[%s1896_s10 + $0x38] sm:$0xff] (!%p1847_p12), %v1838_v7 }
  0x57   : > { %244 = vst [vmem:[%s1896_s10 + $0x40] sm:$0xff] (!%p1847_p12), %v1841_v8  ;;  %245 = vst [vmem:[%s1896_s10 + $0x48] sm:$0xff] (!%p1847_p12), %v1852_v9 }
  0x58   : > { %246 = vst [vmem:[%s1896_s10 + $0x50] sm:$0xff] (!%p1847_p12), %v1855_v10  ;;  %247 = vst [vmem:[%s1896_s10 + $0x58] sm:$0xff] (!%p1847_p12), %v1858_v11 }
  0x59   : > { %248 = vst [vmem:[%s1896_s10 + $0x60] sm:$0xff] (!%p1847_p12), %v1861_v12  ;;  %249 = vst [vmem:[%s1896_s10 + $0x68] sm:$0xff] (!%p1847_p12), %v1864_v13 }
  0x5a   : > { %250 = vst [vmem:[%s1896_s10 + $0x70] sm:$0xff] (!%p1847_p12), %v1867_v14  ;;  %251 = vst [vmem:[%s1896_s10 + $0x78] sm:$0xff] (!%p1847_p12), %v1870_v15 }
  0x5b   : > { %252 = vst [vmem:[%s1896_s10 + $0x80] sm:$0xff] %v1873_v16  ;;  %253 = vst [vmem:[%s1896_s10 + $0x88] sm:$0xff] %v1876_v17 }
  0x5c   : > { %254 = vst [vmem:[%s1896_s10 + $0x90] sm:$0xff] %v1879_v18  ;;  %255 = vst [vmem:[%s1896_s10 + $0x98] sm:$0xff] %v1882_v19 }
  0x5d   : > { %256 = vst [vmem:[%s1896_s10 + $0xa0] sm:$0xff] %v1885_v20  ;;  %257 = vst [vmem:[%s1896_s10 + $0xa8] sm:$0xff] %v1888_v21 }
  0x5e   : > { %258 = vst [vmem:[%s1896_s10 + $0xb0] sm:$0xff] %v1891_v22  ;;  %259 = vst [vmem:[%s1896_s10 + $0xb8] sm:$0xff] %v1894_v23 }
  0x5f PF: > { %p260_p13 = scmp.ne.s32.totalorder %s1808_s16, 0 }
  0x61   : > { %p261_p0 = pnand %p260_p13, %p231_p10 }
  0x62   : > { %v265_v24 = vlaneseq (!%p261_p0) }
  0x63   : > { %264 = sbr.rel (%p261_p0) target bundleno = 281 (0x119), region = 36 }
  0x64   : > { %v266_v25 = vand.u32 (!%p261_p0), 127, %v265_v24 }
  0x66   : > { %v267_v26 = vsub.s32 (!%p261_p0), 127, %v266_v25 }
  0x68   : > { %1548 = vset.pattern.permute.xlu1 (!%p261_p0), %v267_v26  ;;  %1547 = vset.pattern.permute.xlu0 (!%p261_p0), %v267_v26 }
  0x6c   : > { %278 = vperm.xlu1 %1548, %v1821_v2   ;;  %272 = vperm.xlu0 %1547, %v1815_v0  }
  0x70   : > { %281 = vperm.xlu1 %1548, %v1826_v3   ;;  %275 = vperm.xlu0 %1547, %v1818_v1  }
  0x74   : > { %287 = vperm.xlu1 %1548, %v1832_v5   ;;  %284 = vperm.xlu0 %1547, %v1829_v4  }
  0x78   : > { %293 = vperm.xlu1 %1548, %v1838_v7   ;;  %290 = vperm.xlu0 %1547, %v1835_v6  }
  0x7c   : > { %299 = vperm.xlu1 %1548, %v1852_v9   ;;  %296 = vperm.xlu0 %1547, %v1841_v8  }
  0x80   : > { %305 = vperm.xlu1 %1548, %v1858_v11   ;;  %302 = vperm.xlu0 %1547, %v1855_v10  }
  0x84   : > { %311 = vperm.xlu1 %1548, %v1864_v13   ;;  %308 = vperm.xlu0 %1547, %v1861_v12  }
  0x88   : > { %317 = vperm.xlu1 %1548, %v1870_v15   ;;  %314 = vperm.xlu0 %1547, %v1867_v14  }
  0x8c   : > { %323 = vperm.xlu1 %1548, %v1876_v17   ;;  %320 = vperm.xlu0 %1547, %v1873_v16  }
  0x90   : > { %329 = vperm.xlu1 %1548, %v1882_v19   ;;  %326 = vperm.xlu0 %1547, %v1879_v18  }
  0x94   : > { %335 = vperm.xlu1 %1548, %v1888_v21   ;;  %332 = vperm.xlu0 %1547, %v1885_v20  }
  0x98   : > { %341 = vperm.xlu1 %1548, %v1894_v23   ;;  %338 = vperm.xlu0 %1547, %v1891_v22  }
  0xeb   : > { %v279_v27 = vpop.permute.xlu1 %278  ;;  %v273_v28 = vpop.permute.xlu0 %272 }
  0xec   : > { %345 = vst [vmem:[%s1896_s10 + $0x10] sm:$0xff] %v279_v27  ;;  %343 = vst [vmem:[%s1896_s10] sm:$0xff] %v273_v28 }
  0xef   : > { %v282_v29 = vpop.permute.xlu1 %281  ;;  %v276_v30 = vpop.permute.xlu0 %275 }
  0xf0   : > { %346 = vst [vmem:[%s1896_s10 + $0x18] sm:$0xff] %v282_v29  ;;  %344 = vst [vmem:[%s1896_s10 + $0x8] sm:$0xff] %v276_v30 }
  0xf3   : > { %v288_v31 = vpop.permute.xlu1 %287  ;;  %v285_v32 = vpop.permute.xlu0 %284 }
  0xf4   : > { %348 = vst [vmem:[%s1896_s10 + $0x28] sm:$0xff] %v288_v31  ;;  %347 = vst [vmem:[%s1896_s10 + $0x20] sm:$0xff] %v285_v32 }
  0xf7   : > { %v294_v33 = vpop.permute.xlu1 %293  ;;  %v291_v34 = vpop.permute.xlu0 %290 }
  0xf8   : > { %350 = vst [vmem:[%s1896_s10 + $0x38] sm:$0xff] %v294_v33  ;;  %349 = vst [vmem:[%s1896_s10 + $0x30] sm:$0xff] %v291_v34 }
  0xfb   : > { %v300_v35 = vpop.permute.xlu1 %299  ;;  %v297_v36 = vpop.permute.xlu0 %296 }
  0xfc   : > { %352 = vst [vmem:[%s1896_s10 + $0x48] sm:$0xff] %v300_v35  ;;  %351 = vst [vmem:[%s1896_s10 + $0x40] sm:$0xff] %v297_v36 }
  0xff   : > { %v306_v37 = vpop.permute.xlu1 %305  ;;  %v303_v38 = vpop.permute.xlu0 %302 }
 0x100   : > { %354 = vst [vmem:[%s1896_s10 + $0x58] sm:$0xff] %v306_v37  ;;  %353 = vst [vmem:[%s1896_s10 + $0x50] sm:$0xff] %v303_v38 }
 0x103   : > { %v312_v39 = vpop.permute.xlu1 %311  ;;  %v309_v40 = vpop.permute.xlu0 %308 }
 0x104   : > { %356 = vst [vmem:[%s1896_s10 + $0x68] sm:$0xff] %v312_v39  ;;  %355 = vst [vmem:[%s1896_s10 + $0x60] sm:$0xff] %v309_v40 }
 0x107   : > { %v318_v41 = vpop.permute.xlu1 %317  ;;  %v315_v42 = vpop.permute.xlu0 %314 }
 0x108   : > { %358 = vst [vmem:[%s1896_s10 + $0x78] sm:$0xff] %v318_v41  ;;  %357 = vst [vmem:[%s1896_s10 + $0x70] sm:$0xff] %v315_v42 }
 0x10b   : > { %v324_v43 = vpop.permute.xlu1 %323  ;;  %v321_v44 = vpop.permute.xlu0 %320 }
 0x10c   : > { %360 = vst [vmem:[%s1896_s10 + $0x88] sm:$0xff] %v324_v43  ;;  %359 = vst [vmem:[%s1896_s10 + $0x80] sm:$0xff] %v321_v44 }
 0x10f   : > { %v330_v45 = vpop.permute.xlu1 %329  ;;  %v327_v46 = vpop.permute.xlu0 %326 }
 0x110   : > { %362 = vst [vmem:[%s1896_s10 + $0x98] sm:$0xff] %v330_v45  ;;  %361 = vst [vmem:[%s1896_s10 + $0x90] sm:$0xff] %v327_v46 }
 0x113   : > { %v336_v47 = vpop.permute.xlu1 %335  ;;  %v333_v48 = vpop.permute.xlu0 %332 }
 0x114   : > { %364 = vst [vmem:[%s1896_s10 + $0xa8] sm:$0xff] %v336_v47  ;;  %363 = vst [vmem:[%s1896_s10 + $0xa0] sm:$0xff] %v333_v48 }
 0x117   : > { %v342_v49 = vpop.permute.xlu1 %341  ;;  %v339_v50 = vpop.permute.xlu0 %338 }
 0x118   : > { %366 = vst [vmem:[%s1896_s10 + $0xb8] sm:$0xff] %v342_v49  ;;  %365 = vst [vmem:[%s1896_s10 + $0xb0] sm:$0xff] %v339_v50 }
 0x119 PF: > { %p367_p2 = scmp.ne.s32.totalorder %s1810_s7, 0 }
 0x11b   : > { %p368_p3 = pnand %p367_p2, %p230_p9 }
 0x11c   : > { %v378_v51 = vrot.slane (!%p368_p3), %v1826_v3, 7  ;;  %v390_v52 = vrot.slane (!%p368_p3), %v1826_v3, 5  ;;  %v402_v53 = vrot.slane (!%p368_p3), %v1826_v3, 3  ;;  %v414_v54 = vrot.slane (!%p368_p3), %v1826_v3, 1 }
 0x11d   : > { %371 = sbr.rel (%p368_p3) target bundleno = 356 (0x164), region = 40  ;;  %vm480_vm0 = vcmask (!%p368_p3), 1040384   ;;  %vm487_vm1 = vcmask (!%p368_p3), 1041408   ;;  %vm494_vm2 = vcmask (!%p368_p3), 1042432   ;;  %vm501_vm3 = vcmask (!%p368_p3), 1043456  }
 0x11e   : > { %v481_v55 = vsel (!%p368_p3), %vm480_vm0, %v378_v51, %v390_v52  ;;  %vm508_vm4 = vcmask (!%p368_p3), 1044480   ;;  %vm515_vm5 = vcmask (!%p368_p3), 1045504   ;;  %vm522_vm6 = vcmask (!%p368_p3), 1046528  }
 0x11f   : > { %v488_v56 = vsel (!%p368_p3), %vm487_vm1, %v481_v55, %v402_v53  ;;  %v432_v57 = vrot.slane (!%p368_p3), %v1821_v2, 7  ;;  %v444_v58 = vrot.slane (!%p368_p3), %v1821_v2, 5  ;;  %v456_v59 = vrot.slane (!%p368_p3), %v1821_v2, 3 }
 0x120   : > { %v495_v60 = vsel (!%p368_p3), %vm494_vm2, %v488_v56, %v414_v54  ;;  %v468_v61 = vrot.slane (!%p368_p3), %v1821_v2, 1  ;;  %v577_v62 = vrot.slane (!%p368_p3), %v1818_v1, 7  ;;  %v589_v63 = vrot.slane (!%p368_p3), %v1818_v1, 5 }
 0x121   : > { %v502_v24 = vsel (!%p368_p3), %vm501_vm3, %v495_v60, %v378_v51  ;;  %v529_v25 = vsel (!%p368_p3), %vm480_vm0, %v432_v57, %v444_v58  ;;  %v601_v26 = vrot.slane (!%p368_p3), %v1818_v1, 3  ;;  %v613_v27 = vrot.slane (!%p368_p3), %v1818_v1, 1 }
 0x122   : > { %v509_v28 = vsel (!%p368_p3), %vm508_vm4, %v502_v24, %v390_v52  ;;  %v535_v29 = vsel (!%p368_p3), %vm487_vm1, %v529_v25, %v456_v59  ;;  %v679_v30 = vsel (!%p368_p3), %vm480_vm0, %v577_v62, %v589_v63  ;;  %v631_v31 = vrot.slane (!%p368_p3), %v1815_v0, 7 }
 0x123   : > { %v516_v32 = vsel (!%p368_p3), %vm515_vm5, %v509_v28, %v402_v53  ;;  %v541_v33 = vsel (!%p368_p3), %vm494_vm2, %v535_v29, %v468_v61  ;;  %v685_v34 = vsel (!%p368_p3), %vm487_vm1, %v679_v30, %v601_v26  ;;  %v643_v35 = vrot.slane (!%p368_p3), %v1815_v0, 5 }
 0x124   : > { %v523_v36 = vsel %vm522_vm6, %v516_v32, %v414_v54  ;;  %v547_v37 = vsel %vm501_vm3, %v541_v33, %v432_v57  ;;  %v691_v38 = vsel %vm494_vm2, %v685_v34, %v613_v27  ;;  %v655_v39 = vrot.slane %v1815_v0, 3 }
 0x125   : > { %763 = vst [vmem:[%s1896_s10] sm:$0xff] %v523_v36  ;;  %v553_v40 = vsel %vm508_vm4, %v547_v37, %v444_v58  ;;  %v697_v41 = vsel %vm501_vm3, %v691_v38, %v577_v62  ;;  %v667_v42 = vrot.slane %v1815_v0, 1  ;;  %v721_v43 = vsel %vm480_vm0, %v631_v31, %v643_v35 }
 0x126   : > { %v559_v44 = vsel %vm515_vm5, %v553_v40, %v456_v59  ;;  %v703_v45 = vsel %vm508_vm4, %v697_v41, %v589_v63  ;;  %v727_v46 = vsel %vm487_vm1, %v721_v43, %v655_v39  ;;  %v379_v47 = vrot.slane %v1838_v7, 7 }
 0x127   : > { %v565_v48 = vsel %vm522_vm6, %v559_v44, %v468_v61  ;;  %v709_v49 = vsel %vm515_vm5, %v703_v45, %v601_v26  ;;  %v733_v50 = vsel %vm494_vm2, %v727_v46, %v667_v42  ;;  %v391_v51 = vrot.slane %v1838_v7, 5 }
 0x128   : > { %764 = vst [vmem:[%s1896_s10 + $0x8] sm:$0xff] %v565_v48  ;;  %v715_v52 = vsel %vm522_vm6, %v709_v49, %v613_v27  ;;  %v739_v53 = vsel %vm501_vm3, %v733_v50, %v631_v31  ;;  %v403_v54 = vrot.slane %v1838_v7, 3  ;;  %v415_v55 = vrot.slane %v1838_v7, 1 }
 0x129   : > { %765 = vst [vmem:[%s1896_s10 + $0x10] sm:$0xff] %v715_v52  ;;  %v745_v56 = vsel %vm508_vm4, %v739_v53, %v643_v35  ;;  %v482_v57 = vsel %vm480_vm0, %v379_v47, %v391_v51  ;;  %v433_v58 = vrot.slane %v1835_v6, 7  ;;  %v445_v59 = vrot.slane %v1835_v6, 5 }
 0x12a   : > { %v751_v60 = vsel %vm515_vm5, %v745_v56, %v655_v39  ;;  %v489_v61 = vsel %vm487_vm1, %v482_v57, %v403_v54  ;;  %v457_v62 = vrot.slane %v1835_v6, 3  ;;  %v469_v63 = vrot.slane %v1835_v6, 1 }
 0x12b   : > { %v757_v24 = vsel %vm522_vm6, %v751_v60, %v667_v42  ;;  %v496_v25 = vsel %vm494_vm2, %v489_v61, %v415_v55  ;;  %v530_v26 = vsel %vm480_vm0, %v433_v58, %v445_v59  ;;  %v578_v27 = vrot.slane %v1832_v5, 7 }
 0x12c   : > { %766 = vst [vmem:[%s1896_s10 + $0x18] sm:$0xff] %v757_v24  ;;  %v503_v28 = vsel %vm501_vm3, %v496_v25, %v379_v47  ;;  %v536_v29 = vsel %vm487_vm1, %v530_v26, %v457_v62  ;;  %v590_v30 = vrot.slane %v1832_v5, 5  ;;  %v602_v31 = vrot.slane %v1832_v5, 3 }
 0x12d   : > { %v510_v32 = vsel %vm508_vm4, %v503_v28, %v391_v51  ;;  %v542_v33 = vsel %vm494_vm2, %v536_v29, %v469_v63  ;;  %v614_v34 = vrot.slane %v1832_v5, 1  ;;  %v632_v35 = vrot.slane %v1829_v4, 7 }
 0x12e   : > { %v517_v36 = vsel %vm515_vm5, %v510_v32, %v403_v54  ;;  %v548_v37 = vsel %vm501_vm3, %v542_v33, %v433_v58  ;;  %v680_v38 = vsel %vm480_vm0, %v578_v27, %v590_v30  ;;  %v644_v39 = vrot.slane %v1829_v4, 5 }
 0x12f   : > { %v524_v40 = vsel %vm522_vm6, %v517_v36, %v415_v55  ;;  %v554_v41 = vsel %vm508_vm4, %v548_v37, %v445_v59  ;;  %v686_v42 = vsel %vm487_vm1, %v680_v38, %v602_v31  ;;  %v656_v43 = vrot.slane %v1829_v4, 3 }
 0x130   : > { %767 = vst [vmem:[%s1896_s10 + $0x20] sm:$0xff] %v524_v40  ;;  %v560_v44 = vsel %vm515_vm5, %v554_v41, %v457_v62  ;;  %v692_v45 = vsel %vm494_vm2, %v686_v42, %v614_v34  ;;  %v668_v46 = vrot.slane %v1829_v4, 1  ;;  %v722_v47 = vsel %vm480_vm0, %v632_v35, %v644_v39 }
 0x131   : > { %v566_v48 = vsel %vm522_vm6, %v560_v44, %v469_v63  ;;  %v698_v49 = vsel %vm501_vm3, %v692_v45, %v578_v27  ;;  %v728_v50 = vsel %vm487_vm1, %v722_v47, %v656_v43  ;;  %v380_v51 = vrot.slane %v1858_v11, 7 }
 0x132   : > { %768 = vst [vmem:[%s1896_s10 + $0x28] sm:$0xff] %v566_v48  ;;  %v704_v52 = vsel %vm508_vm4, %v698_v49, %v590_v30  ;;  %v734_v53 = vsel %vm494_vm2, %v728_v50, %v668_v46  ;;  %v392_v54 = vrot.slane %v1858_v11, 5  ;;  %v404_v55 = vrot.slane %v1858_v11, 3 }
 0x133   : > { %v710_v56 = vsel %vm515_vm5, %v704_v52, %v602_v31  ;;  %v740_v57 = vsel %vm501_vm3, %v734_v53, %v632_v35  ;;  %v416_v58 = vrot.slane %v1858_v11, 1  ;;  %v434_v59 = vrot.slane %v1855_v10, 7 }
 0x134   : > { %v716_v60 = vsel %vm522_vm6, %v710_v56, %v614_v34  ;;  %v746_v61 = vsel %vm508_vm4, %v740_v57, %v644_v39  ;;  %v483_v62 = vsel %vm480_vm0, %v380_v51, %v392_v54  ;;  %v446_v63 = vrot.slane %v1855_v10, 5 }
 0x135   : > { %769 = vst [vmem:[%s1896_s10 + $0x30] sm:$0xff] %v716_v60  ;;  %v752_v24 = vsel %vm515_vm5, %v746_v61, %v656_v43  ;;  %v490_v25 = vsel %vm487_vm1, %v483_v62, %v404_v55  ;;  %v458_v26 = vrot.slane %v1855_v10, 3  ;;  %v470_v27 = vrot.slane %v1855_v10, 1 }
 0x136   : > { %v758_v28 = vsel %vm522_vm6, %v752_v24, %v668_v46  ;;  %v497_v29 = vsel %vm494_vm2, %v490_v25, %v416_v58  ;;  %v531_v30 = vsel %vm480_vm0, %v434_v59, %v446_v63  ;;  %v579_v31 = vrot.slane %v1852_v9, 7 }
 0x137   : > { %770 = vst [vmem:[%s1896_s10 + $0x38] sm:$0xff] %v758_v28  ;;  %v504_v32 = vsel %vm501_vm3, %v497_v29, %v380_v51  ;;  %v537_v33 = vsel %vm487_vm1, %v531_v30, %v458_v26  ;;  %v591_v34 = vrot.slane %v1852_v9, 5  ;;  %v603_v35 = vrot.slane %v1852_v9, 3 }
 0x138   : > { %v511_v36 = vsel %vm508_vm4, %v504_v32, %v392_v54  ;;  %v543_v37 = vsel %vm494_vm2, %v537_v33, %v470_v27  ;;  %v615_v38 = vrot.slane %v1852_v9, 1  ;;  %v633_v39 = vrot.slane %v1841_v8, 7 }
 0x139   : > { %v518_v40 = vsel %vm515_vm5, %v511_v36, %v404_v55  ;;  %v549_v41 = vsel %vm501_vm3, %v543_v37, %v434_v59  ;;  %v681_v42 = vsel %vm480_vm0, %v579_v31, %v591_v34  ;;  %v645_v43 = vrot.slane %v1841_v8, 5 }
 0x13a   : > { %v525_v44 = vsel %vm522_vm6, %v518_v40, %v416_v58  ;;  %v555_v45 = vsel %vm508_vm4, %v549_v41, %v446_v63  ;;  %v687_v46 = vsel %vm487_vm1, %v681_v42, %v603_v35  ;;  %v657_v47 = vrot.slane %v1841_v8, 3 }
 0x13b   : > { %771 = vst [vmem:[%s1896_s10 + $0x40] sm:$0xff] %v525_v44  ;;  %v561_v48 = vsel %vm515_vm5, %v555_v45, %v458_v26  ;;  %v693_v49 = vsel %vm494_vm2, %v687_v46, %v615_v38  ;;  %v669_v50 = vrot.slane %v1841_v8, 1  ;;  %v723_v51 = vsel %vm480_vm0, %v633_v39, %v645_v43 }
 0x13c   : > { %v567_v52 = vsel %vm522_vm6, %v561_v48, %v470_v27  ;;  %v699_v53 = vsel %vm501_vm3, %v693_v49, %v579_v31  ;;  %v729_v54 = vsel %vm487_vm1, %v723_v51, %v657_v47  ;;  %v381_v55 = vrot.slane %v1870_v15, 7 }
 0x13d   : > { %772 = vst [vmem:[%s1896_s10 + $0x48] sm:$0xff] %v567_v52  ;;  %v705_v56 = vsel %vm508_vm4, %v699_v53, %v591_v34  ;;  %v735_v57 = vsel %vm494_vm2, %v729_v54, %v669_v50  ;;  %v393_v58 = vrot.slane %v1870_v15, 5  ;;  %v405_v59 = vrot.slane %v1870_v15, 3 }
 0x13e   : > { %v711_v60 = vsel %vm515_vm5, %v705_v56, %v603_v35  ;;  %v741_v61 = vsel %vm501_vm3, %v735_v57, %v633_v39  ;;  %v417_v62 = vrot.slane %v1870_v15, 1  ;;  %v435_v63 = vrot.slane %v1867_v14, 7 }
 0x13f   : > { %v717_v24 = vsel %vm522_vm6, %v711_v60, %v615_v38  ;;  %v747_v25 = vsel %vm508_vm4, %v741_v61, %v645_v43  ;;  %v484_v26 = vsel %vm480_vm0, %v381_v55, %v393_v58  ;;  %v447_v27 = vrot.slane %v1867_v14, 5 }
 0x140   : > { %773 = vst [vmem:[%s1896_s10 + $0x50] sm:$0xff] %v717_v24  ;;  %v753_v28 = vsel %vm515_vm5, %v747_v25, %v657_v47  ;;  %v491_v29 = vsel %vm487_vm1, %v484_v26, %v405_v59  ;;  %v459_v30 = vrot.slane %v1867_v14, 3  ;;  %v471_v31 = vrot.slane %v1867_v14, 1 }
 0x141   : > { %v759_v32 = vsel %vm522_vm6, %v753_v28, %v669_v50  ;;  %v498_v33 = vsel %vm494_vm2, %v491_v29, %v417_v62  ;;  %v532_v34 = vsel %vm480_vm0, %v435_v63, %v447_v27  ;;  %v580_v35 = vrot.slane %v1864_v13, 7 }
 0x142   : > { %774 = vst [vmem:[%s1896_s10 + $0x58] sm:$0xff] %v759_v32  ;;  %v505_v36 = vsel %vm501_vm3, %v498_v33, %v381_v55  ;;  %v538_v37 = vsel %vm487_vm1, %v532_v34, %v459_v30  ;;  %v592_v38 = vrot.slane %v1864_v13, 5  ;;  %v604_v39 = vrot.slane %v1864_v13, 3 }
 0x143   : > { %v512_v40 = vsel %vm508_vm4, %v505_v36, %v393_v58  ;;  %v544_v41 = vsel %vm494_vm2, %v538_v37, %v471_v31  ;;  %v616_v42 = vrot.slane %v1864_v13, 1  ;;  %v634_v43 = vrot.slane %v1861_v12, 7 }
 0x144   : > { %v519_v44 = vsel %vm515_vm5, %v512_v40, %v405_v59  ;;  %v550_v45 = vsel %vm501_vm3, %v544_v41, %v435_v63  ;;  %v682_v46 = vsel %vm480_vm0, %v580_v35, %v592_v38  ;;  %v646_v47 = vrot.slane %v1861_v12, 5 }
 0x145   : > { %v526_v48 = vsel %vm522_vm6, %v519_v44, %v417_v62  ;;  %v556_v49 = vsel %vm508_vm4, %v550_v45, %v447_v27  ;;  %v688_v50 = vsel %vm487_vm1, %v682_v46, %v604_v39  ;;  %v658_v51 = vrot.slane %v1861_v12, 3 }
 0x146   : > { %775 = vst [vmem:[%s1896_s10 + $0x60] sm:$0xff] %v526_v48  ;;  %v562_v52 = vsel %vm515_vm5, %v556_v49, %v459_v30  ;;  %v694_v53 = vsel %vm494_vm2, %v688_v50, %v616_v42  ;;  %v670_v54 = vrot.slane %v1861_v12, 1  ;;  %v724_v55 = vsel %vm480_vm0, %v634_v43, %v646_v47 }
 0x147   : > { %v568_v56 = vsel %vm522_vm6, %v562_v52, %v471_v31  ;;  %v700_v57 = vsel %vm501_vm3, %v694_v53, %v580_v35  ;;  %v730_v58 = vsel %vm487_vm1, %v724_v55, %v658_v51  ;;  %v382_v59 = vrot.slane %v1882_v19, 7 }
 0x148   : > { %776 = vst [vmem:[%s1896_s10 + $0x68] sm:$0xff] %v568_v56  ;;  %v706_v60 = vsel %vm508_vm4, %v700_v57, %v592_v38  ;;  %v736_v61 = vsel %vm494_vm2, %v730_v58, %v670_v54  ;;  %v394_v62 = vrot.slane %v1882_v19, 5  ;;  %v406_v63 = vrot.slane %v1882_v19, 3 }
 0x149   : > { %v712_v24 = vsel %vm515_vm5, %v706_v60, %v604_v39  ;;  %v742_v25 = vsel %vm501_vm3, %v736_v61, %v634_v43  ;;  %v418_v26 = vrot.slane %v1882_v19, 1  ;;  %v436_v27 = vrot.slane %v1879_v18, 7 }
 0x14a   : > { %v718_v28 = vsel %vm522_vm6, %v712_v24, %v616_v42  ;;  %v748_v29 = vsel %vm508_vm4, %v742_v25, %v646_v47  ;;  %v485_v30 = vsel %vm480_vm0, %v382_v59, %v394_v62  ;;  %v448_v31 = vrot.slane %v1879_v18, 5 }
 0x14b   : > { %777 = vst [vmem:[%s1896_s10 + $0x70] sm:$0xff] %v718_v28  ;;  %v754_v32 = vsel %vm515_vm5, %v748_v29, %v658_v51  ;;  %v492_v33 = vsel %vm487_vm1, %v485_v30, %v406_v63  ;;  %v460_v34 = vrot.slane %v1879_v18, 3  ;;  %v472_v35 = vrot.slane %v1879_v18, 1 }
 0x14c   : > { %v760_v36 = vsel %vm522_vm6, %v754_v32, %v670_v54  ;;  %v499_v37 = vsel %vm494_vm2, %v492_v33, %v418_v26  ;;  %v533_v38 = vsel %vm480_vm0, %v436_v27, %v448_v31  ;;  %v581_v39 = vrot.slane %v1876_v17, 7 }
 0x14d   : > { %778 = vst [vmem:[%s1896_s10 + $0x78] sm:$0xff] %v760_v36  ;;  %v506_v40 = vsel %vm501_vm3, %v499_v37, %v382_v59  ;;  %v539_v41 = vsel %vm487_vm1, %v533_v38, %v460_v34  ;;  %v593_v42 = vrot.slane %v1876_v17, 5  ;;  %v605_v43 = vrot.slane %v1876_v17, 3 }
 0x14e   : > { %v513_v44 = vsel %vm508_vm4, %v506_v40, %v394_v62  ;;  %v545_v45 = vsel %vm494_vm2, %v539_v41, %v472_v35  ;;  %v617_v46 = vrot.slane %v1876_v17, 1  ;;  %v635_v47 = vrot.slane %v1873_v16, 7 }
 0x14f   : > { %v520_v48 = vsel %vm515_vm5, %v513_v44, %v406_v63  ;;  %v551_v49 = vsel %vm501_vm3, %v545_v45, %v436_v27  ;;  %v683_v50 = vsel %vm480_vm0, %v581_v39, %v593_v42  ;;  %v647_v51 = vrot.slane %v1873_v16, 5 }
 0x150   : > { %v527_v52 = vsel %vm522_vm6, %v520_v48, %v418_v26  ;;  %v557_v53 = vsel %vm508_vm4, %v551_v49, %v448_v31  ;;  %v689_v54 = vsel %vm487_vm1, %v683_v50, %v605_v43  ;;  %v659_v55 = vrot.slane %v1873_v16, 3 }
 0x151   : > { %779 = vst [vmem:[%s1896_s10 + $0x80] sm:$0xff] %v527_v52  ;;  %v563_v56 = vsel %vm515_vm5, %v557_v53, %v460_v34  ;;  %v695_v57 = vsel %vm494_vm2, %v689_v54, %v617_v46  ;;  %v671_v58 = vrot.slane %v1873_v16, 1  ;;  %v725_v59 = vsel %vm480_vm0, %v635_v47, %v647_v51 }
 0x152   : > { %v569_v60 = vsel %vm522_vm6, %v563_v56, %v472_v35  ;;  %v701_v61 = vsel %vm501_vm3, %v695_v57, %v581_v39  ;;  %v731_v62 = vsel %vm487_vm1, %v725_v59, %v659_v55  ;;  %v383_v63 = vrot.slane %v1894_v23, 7 }
 0x153   : > { %780 = vst [vmem:[%s1896_s10 + $0x88] sm:$0xff] %v569_v60  ;;  %v707_v24 = vsel %vm508_vm4, %v701_v61, %v593_v42  ;;  %v737_v25 = vsel %vm494_vm2, %v731_v62, %v671_v58  ;;  %v395_v26 = vrot.slane %v1894_v23, 5  ;;  %v407_v27 = vrot.slane %v1894_v23, 3 }
 0x154   : > { %v713_v28 = vsel %vm515_vm5, %v707_v24, %v605_v43  ;;  %v743_v29 = vsel %vm501_vm3, %v737_v25, %v635_v47  ;;  %v419_v30 = vrot.slane %v1894_v23, 1  ;;  %v437_v31 = vrot.slane %v1891_v22, 7 }
 0x155   : > { %v719_v32 = vsel %vm522_vm6, %v713_v28, %v617_v46  ;;  %v749_v33 = vsel %vm508_vm4, %v743_v29, %v647_v51  ;;  %v486_v34 = vsel %vm480_vm0, %v383_v63, %v395_v26  ;;  %v449_v35 = vrot.slane %v1891_v22, 5 }
 0x156   : > { %781 = vst [vmem:[%s1896_s10 + $0x90] sm:$0xff] %v719_v32  ;;  %v755_v36 = vsel %vm515_vm5, %v749_v33, %v659_v55  ;;  %v493_v37 = vsel %vm487_vm1, %v486_v34, %v407_v27  ;;  %v461_v38 = vrot.slane %v1891_v22, 3  ;;  %v473_v39 = vrot.slane %v1891_v22, 1 }
 0x157   : > { %v761_v40 = vsel %vm522_vm6, %v755_v36, %v671_v58  ;;  %v500_v41 = vsel %vm494_vm2, %v493_v37, %v419_v30  ;;  %v534_v42 = vsel %vm480_vm0, %v437_v31, %v449_v35  ;;  %v582_v43 = vrot.slane %v1888_v21, 7 }
 0x158   : > { %782 = vst [vmem:[%s1896_s10 + $0x98] sm:$0xff] %v761_v40  ;;  %v507_v44 = vsel %vm501_vm3, %v500_v41, %v383_v63  ;;  %v540_v45 = vsel %vm487_vm1, %v534_v42, %v461_v38  ;;  %v594_v46 = vrot.slane %v1888_v21, 5  ;;  %v606_v47 = vrot.slane %v1888_v21, 3 }
 0x159   : > { %v514_v48 = vsel %vm508_vm4, %v507_v44, %v395_v26  ;;  %v546_v49 = vsel %vm494_vm2, %v540_v45, %v473_v39  ;;  %v618_v50 = vrot.slane %v1888_v21, 1  ;;  %v636_v51 = vrot.slane %v1885_v20, 7 }
 0x15a   : > { %v521_v52 = vsel %vm515_vm5, %v514_v48, %v407_v27  ;;  %v552_v53 = vsel %vm501_vm3, %v546_v49, %v437_v31  ;;  %v684_v54 = vsel %vm480_vm0, %v582_v43, %v594_v46  ;;  %v648_v55 = vrot.slane %v1885_v20, 5 }
 0x15b   : > { %v528_v56 = vsel %vm522_vm6, %v521_v52, %v419_v30  ;;  %v558_v57 = vsel %vm508_vm4, %v552_v53, %v449_v35  ;;  %v690_v58 = vsel %vm487_vm1, %v684_v54, %v606_v47  ;;  %v660_v59 = vrot.slane %v1885_v20, 3 }
 0x15c   : > { %783 = vst [vmem:[%s1896_s10 + $0xa0] sm:$0xff] %v528_v56  ;;  %v564_v60 = vsel %vm515_vm5, %v558_v57, %v461_v38  ;;  %v696_v61 = vsel %vm494_vm2, %v690_v58, %v618_v50  ;;  %v672_v62 = vrot.slane %v1885_v20, 1  ;;  %v726_v63 = vsel %vm480_vm0, %v636_v51, %v648_v55 }
 0x15d   : > { %v570_v24 = vsel %vm522_vm6, %v564_v60, %v473_v39  ;;  %v702_v25 = vsel %vm501_vm3, %v696_v61, %v582_v43  ;;  %v732_v26 = vsel %vm487_vm1, %v726_v63, %v660_v59 }
 0x15e   : > { %784 = vst [vmem:[%s1896_s10 + $0xa8] sm:$0xff] %v570_v24  ;;  %v708_v27 = vsel %vm508_vm4, %v702_v25, %v594_v46  ;;  %v738_v28 = vsel %vm494_vm2, %v732_v26, %v672_v62 }
 0x15f   : > { %v714_v29 = vsel %vm515_vm5, %v708_v27, %v606_v47  ;;  %v744_v30 = vsel %vm501_vm3, %v738_v28, %v636_v51 }
 0x160   : > { %v720_v31 = vsel %vm522_vm6, %v714_v29, %v618_v50  ;;  %v750_v32 = vsel %vm508_vm4, %v744_v30, %v648_v55 }
 0x161   : > { %785 = vst [vmem:[%s1896_s10 + $0xb0] sm:$0xff] %v720_v31  ;;  %v756_v33 = vsel %vm515_vm5, %v750_v32, %v660_v59 }
 0x162   : > { %v762_v34 = vsel %vm522_vm6, %v756_v33, %v672_v62 }
 0x163   : > { %786 = vst [vmem:[%s1896_s10 + $0xb8] sm:$0xff] %v762_v34 }
 0x164 PF: > { %p787_p6 = pnand %p367_p2, %p260_p13 }
 0x165   : > { %v791_v35 = vlaneseq (!%p787_p6)  ;;  %vm977_vm7 = vcmask (!%p787_p6), 1040384   ;;  %vm984_vm8 = vcmask (!%p787_p6), 1041408   ;;  %vm991_vm9 = vcmask (!%p787_p6), 1042432  }
 0x166   : > { %790 = sbr.rel (%p787_p6) target bundleno = 567 (0x237), region = 44  ;;  %vm998_vm10 = vcmask (!%p787_p6), 1043456   ;;  %vm1005_vm11 = vcmask (!%p787_p6), 1044480   ;;  %vm1012_vm12 = vcmask (!%p787_p6), 1045504   ;;  %vm1019_vm13 = vcmask (!%p787_p6), 1046528  }
 0x167   : > { %v792_v36 = vand.u32 (!%p787_p6), 127, %v791_v35 }
 0x169   : > { %v793_v37 = vsub.s32 (!%p787_p6), 127, %v792_v36 }
 0x16b   : > { %1550 = vset.pattern.permute.xlu1 (!%p787_p6), %v793_v37  ;;  %1549 = vset.pattern.permute.xlu0 (!%p787_p6), %v793_v37 }
 0x16f   : > { %804 = vperm.xlu1 %1550, %v1821_v2   ;;  %798 = vperm.xlu0 %1549, %v1815_v0  }
 0x173   : > { %807 = vperm.xlu1 %1550, %v1826_v3   ;;  %801 = vperm.xlu0 %1549, %v1818_v1  }
 0x177   : > { %813 = vperm.xlu1 %1550, %v1832_v5   ;;  %810 = vperm.xlu0 %1549, %v1829_v4  }
 0x17b   : > { %819 = vperm.xlu1 %1550, %v1838_v7   ;;  %816 = vperm.xlu0 %1549, %v1835_v6  }
 0x17f   : > { %825 = vperm.xlu1 %1550, %v1852_v9   ;;  %822 = vperm.xlu0 %1549, %v1841_v8  }
 0x183   : > { %831 = vperm.xlu1 %1550, %v1858_v11   ;;  %828 = vperm.xlu0 %1549, %v1855_v10  }
 0x187   : > { %837 = vperm.xlu1 %1550, %v1864_v13   ;;  %834 = vperm.xlu0 %1549, %v1861_v12  }
 0x18b   : > { %843 = vperm.xlu1 %1550, %v1870_v15   ;;  %840 = vperm.xlu0 %1549, %v1867_v14  }
 0x18f   : > { %849 = vperm.xlu1 %1550, %v1876_v17   ;;  %846 = vperm.xlu0 %1549, %v1873_v16  }
 0x193   : > { %855 = vperm.xlu1 %1550, %v1882_v19   ;;  %852 = vperm.xlu0 %1549, %v1879_v18  }
 0x197   : > { %861 = vperm.xlu1 %1550, %v1888_v21   ;;  %858 = vperm.xlu0 %1549, %v1885_v20  }
 0x19b   : > { %867 = vperm.xlu1 %1550, %v1894_v23   ;;  %864 = vperm.xlu0 %1549, %v1891_v22  }
 0x1ee   : > { %v805_v0 = vpop.permute.xlu1 %804  ;;  %v799_v1 = vpop.permute.xlu0 %798 }
 0x1ef   : > { %v929_v2 = vrot.slane %v805_v0, 7  ;;  %v941_v3 = vrot.slane %v805_v0, 5  ;;  %v953_v4 = vrot.slane %v805_v0, 3  ;;  %v1128_v5 = vrot.slane %v799_v1, 7 }
 0x1f0   : > { %v1140_v6 = vrot.slane %v799_v1, 5  ;;  %v1152_v7 = vrot.slane %v799_v1, 3  ;;  %v965_v8 = vrot.slane %v805_v0, 1  ;;  %v1164_v11 = vrot.slane %v799_v1, 1 }
 0x1f1   : > { %v1026_v9 = vsel %vm977_vm7, %v929_v2, %v941_v3 }
 0x1f2   : > { %v1032_v10 = vsel %vm984_vm8, %v1026_v9, %v953_v4  ;;  %v1218_v12 = vsel %vm977_vm7, %v1128_v5, %v1140_v6  ;;  %v808_v13 = vpop.permute.xlu1 %807  ;;  %v802_v14 = vpop.permute.xlu0 %801 }
 0x1f3   : > { %v1038_v15 = vsel %vm991_vm9, %v1032_v10, %v965_v8  ;;  %v1224_v16 = vsel %vm984_vm8, %v1218_v12, %v1152_v7  ;;  %v875_v17 = vrot.slane %v808_v13, 7  ;;  %v887_v18 = vrot.slane %v808_v13, 5 }
 0x1f4   : > { %v1044_v19 = vsel %vm998_vm10, %v1038_v15, %v929_v2  ;;  %v1230_v20 = vsel %vm991_vm9, %v1224_v16, %v1164_v11  ;;  %v899_v21 = vrot.slane %v808_v13, 3  ;;  %v911_v22 = vrot.slane %v808_v13, 1 }
 0x1f5   : > { %v1050_v23 = vsel %vm1005_vm11, %v1044_v19, %v941_v3  ;;  %v1236_v38 = vsel %vm998_vm10, %v1230_v20, %v1128_v5  ;;  %v978_v39 = vsel %vm977_vm7, %v875_v17, %v887_v18  ;;  %v1074_v40 = vrot.slane %v802_v14, 7 }
 0x1f6   : > { %v1056_v41 = vsel %vm1012_vm12, %v1050_v23, %v953_v4  ;;  %v1242_v42 = vsel %vm1005_vm11, %v1236_v38, %v1140_v6  ;;  %v985_v43 = vsel %vm984_vm8, %v978_v39, %v899_v21  ;;  %v1086_v44 = vrot.slane %v802_v14, 5  ;;  %v814_v45 = vpop.permute.xlu1 %813  ;;  %v2335_v46 = vpop.permute.xlu0 %810 }
 0x1f7   : > { %v1062_v47 = vsel %vm1019_vm13, %v1056_v41, %v965_v8  ;;  %v1248_v48 = vsel %vm1012_vm12, %v1242_v42, %v1152_v7  ;;  %v992_v49 = vsel %vm991_vm9, %v985_v43, %v911_v22  ;;  %v1098_v50 = vrot.slane %v802_v14, 3 }
 0x1f8   : > { %1261 = vst [vmem:[%s1896_s10 + $0x8] sm:$0xff] %v1062_v47  ;;  %v1254_v51 = vsel %vm1019_vm13, %v1248_v48, %v1164_v11  ;;  %v999_v52 = vsel %vm998_vm10, %v992_v49, %v875_v17  ;;  %v1110_v53 = vrot.slane %v802_v14, 1  ;;  %v1176_v54 = vsel %vm977_vm7, %v1074_v40, %v1086_v44 }
 0x1f9   : > { %1263 = vst [vmem:[%s1896_s10 + $0x18] sm:$0xff] %v1254_v51  ;;  %v1006_v55 = vsel %vm1005_vm11, %v999_v52, %v887_v18  ;;  %v1182_v56 = vsel %vm984_vm8, %v1176_v54, %v1098_v50  ;;  %v1075_v57 = vrot.slane %v814_v45, 7  ;;  %v1087_v58 = vrot.slane %v814_v45, 5 }
 0x1fa   : > { %v1013_v59 = vsel %vm1012_vm12, %v1006_v55, %v899_v21  ;;  %v1188_v60 = vsel %vm991_vm9, %v1182_v56, %v1110_v53  ;;  %v1099_v61 = vrot.slane %v814_v45, 3  ;;  %v1111_v62 = vrot.slane %v814_v45, 1  ;;  %v820_v63 = vpop.permute.xlu1 %819  ;;  %v2349_v24 = vpop.permute.xlu0 %816 }
 0x1fb   : > { %v1020_v25 = vsel %vm1019_vm13, %v1013_v59, %v911_v22  ;;  %v1194_v26 = vsel %vm998_vm10, %v1188_v60, %v1074_v40  ;;  %v1177_v27 = vsel %vm977_vm7, %v1075_v57, %v1087_v58  ;;  %v1129_v28 = vrot.slane %v2335_v46, 7 }
 0x1fc   : > { %1260 = vst [vmem:[%s1896_s10] sm:$0xff] %v1020_v25  ;;  %v1200_v29 = vsel %vm1005_vm11, %v1194_v26, %v1086_v44  ;;  %v1183_v30 = vsel %vm984_vm8, %v1177_v27, %v1099_v61  ;;  %v1141_v31 = vrot.slane %v2335_v46, 5  ;;  %v1153_v32 = vrot.slane %v2335_v46, 3 }
 0x1fd   : > { %v1206_v33 = vsel %vm1012_vm12, %v1200_v29, %v1098_v50  ;;  %v1189_v34 = vsel %vm991_vm9, %v1183_v30, %v1111_v62  ;;  %v1165_v35 = vrot.slane %v2335_v46, 1  ;;  %v876_v36 = vrot.slane %v820_v63, 7 }
 0x1fe   : > { %v1212_v37 = vsel %vm1019_vm13, %v1206_v33, %v1110_v53  ;;  %v1195_v0 = vsel %vm998_vm10, %v1189_v34, %v1075_v57  ;;  %v1219_v1 = vsel %vm977_vm7, %v1129_v28, %v1141_v31  ;;  %v888_v2 = vrot.slane %v820_v63, 5  ;;  %v2366_v3 = vpop.permute.xlu1 %825  ;;  %v2371_v8 = vpop.permute.xlu0 %822 }
 0x1ff   : > { %1262 = vst [vmem:[%s1896_s10 + $0x10] sm:$0xff] %v1212_v37  ;;  %v1201_v4 = vsel %vm1005_vm11, %v1195_v0, %v1087_v58  ;;  %v1225_v5 = vsel %vm984_vm8, %v1219_v1, %v1153_v32  ;;  %v900_v6 = vrot.slane %v820_v63, 3  ;;  %v912_v7 = vrot.slane %v820_v63, 1 }
 0x200   : > { %v1207_v9 = vsel %vm1012_vm12, %v1201_v4, %v1099_v61  ;;  %v1231_v10 = vsel %vm991_vm9, %v1225_v5, %v1165_v35  ;;  %v979_v11 = vsel %vm977_vm7, %v876_v36, %v888_v2  ;;  %v930_v12 = vrot.slane %v2349_v24, 7 }
 0x201   : > { %v1213_v13 = vsel %vm1019_vm13, %v1207_v9, %v1111_v62  ;;  %v1237_v14 = vsel %vm998_vm10, %v1231_v10, %v1129_v28  ;;  %v986_v15 = vsel %vm984_vm8, %v979_v11, %v900_v6  ;;  %v942_v16 = vrot.slane %v2349_v24, 5 }
 0x202   : > { %1266 = vst [vmem:[%s1896_s10 + $0x30] sm:$0xff] %v1213_v13  ;;  %v1243_v17 = vsel %vm1005_vm11, %v1237_v14, %v1141_v31  ;;  %v993_v18 = vsel %vm991_vm9, %v986_v15, %v912_v7  ;;  %v954_v19 = vrot.slane %v2349_v24, 3  ;;  %v966_v20 = vrot.slane %v2349_v24, 1  ;;  %v2386_v21 = vpop.permute.xlu1 %831  ;;  %v2401_v48 = vpop.permute.xlu0 %828 }
 0x203   : > { %v1249_v22 = vsel %vm1012_vm12, %v1243_v17, %v1153_v32  ;;  %v1000_v23 = vsel %vm998_vm10, %v993_v18, %v876_v36  ;;  %v1027_v38 = vsel %vm977_vm7, %v930_v12, %v942_v16  ;;  %v1076_v39 = vrot.slane %v2366_v3, 7 }
 0x204   : > { %v1255_v40 = vsel %vm1019_vm13, %v1249_v22, %v1165_v35  ;;  %v1007_v41 = vsel %vm1005_vm11, %v1000_v23, %v888_v2  ;;  %v1033_v42 = vsel %vm984_vm8, %v1027_v38, %v954_v19  ;;  %v1088_v43 = vrot.slane %v2366_v3, 5 }
 0x205   : > { %1267 = vst [vmem:[%s1896_s10 + $0x38] sm:$0xff] %v1255_v40  ;;  %v1014_v44 = vsel %vm1012_vm12, %v1007_v41, %v900_v6  ;;  %v1039_v45 = vsel %vm991_vm9, %v1033_v42, %v966_v20  ;;  %v1100_v46 = vrot.slane %v2366_v3, 3  ;;  %v1112_v47 = vrot.slane %v2366_v3, 1 }
 0x206   : > { %v1021_v49 = vsel %vm1019_vm13, %v1014_v44, %v912_v7  ;;  %v1045_v50 = vsel %vm998_vm10, %v1039_v45, %v930_v12  ;;  %v1178_v51 = vsel %vm977_vm7, %v1076_v39, %v1088_v43  ;;  %v1130_v52 = vrot.slane %v2371_v8, 7  ;;  %v2416_v61 = vpop.permute.xlu1 %837  ;;  %v2431_v34 = vpop.permute.xlu0 %834 }
 0x207   : > { %1264 = vst [vmem:[%s1896_s10 + $0x20] sm:$0xff] %v1021_v49  ;;  %v1051_v53 = vsel %vm1005_vm11, %v1045_v50, %v942_v16  ;;  %v1184_v54 = vsel %vm984_vm8, %v1178_v51, %v1100_v46  ;;  %v1142_v55 = vrot.slane %v2371_v8, 5  ;;  %v1154_v56 = vrot.slane %v2371_v8, 3 }
 0x208   : > { %v1057_v57 = vsel %vm1012_vm12, %v1051_v53, %v954_v19  ;;  %v1190_v58 = vsel %vm991_vm9, %v1184_v54, %v1112_v47  ;;  %v1166_v59 = vrot.slane %v2371_v8, 1  ;;  %v877_v60 = vrot.slane %v2386_v21, 7 }
 0x209   : > { %v1063_v62 = vsel %vm1019_vm13, %v1057_v57, %v966_v20  ;;  %v1196_v63 = vsel %vm998_vm10, %v1190_v58, %v1076_v39  ;;  %v1220_v24 = vsel %vm977_vm7, %v1130_v52, %v1142_v55  ;;  %v889_v25 = vrot.slane %v2386_v21, 5 }
 0x20a   : > { %1265 = vst [vmem:[%s1896_s10 + $0x28] sm:$0xff] %v1063_v62  ;;  %v1202_v26 = vsel %vm1005_vm11, %v1196_v63, %v1088_v43  ;;  %v1226_v27 = vsel %vm984_vm8, %v1220_v24, %v1154_v56  ;;  %v901_v28 = vrot.slane %v2386_v21, 3  ;;  %v913_v29 = vrot.slane %v2386_v21, 1  ;;  %v2446_v9 = vpop.permute.xlu1 %843  ;;  %v2461_v22 = vpop.permute.xlu0 %840 }
 0x20b   : > { %v1208_v30 = vsel %vm1012_vm12, %v1202_v26, %v1100_v46  ;;  %v1232_v31 = vsel %vm991_vm9, %v1226_v27, %v1166_v59  ;;  %v980_v32 = vsel %vm977_vm7, %v877_v60, %v889_v25  ;;  %v931_v33 = vrot.slane %v2401_v48, 7 }
 0x20c   : > { %v1214_v35 = vsel %vm1019_vm13, %v1208_v30, %v1112_v47  ;;  %v1238_v36 = vsel %vm998_vm10, %v1232_v31, %v1130_v52  ;;  %v987_v37 = vsel %vm984_vm8, %v980_v32, %v901_v28  ;;  %v943_v0 = vrot.slane %v2401_v48, 5 }
 0x20d   : > { %1270 = vst [vmem:[%s1896_s10 + $0x50] sm:$0xff] %v1214_v35  ;;  %v1244_v1 = vsel %vm1005_vm11, %v1238_v36, %v1142_v55  ;;  %v994_v2 = vsel %vm991_vm9, %v987_v37, %v913_v29  ;;  %v955_v3 = vrot.slane %v2401_v48, 3  ;;  %v967_v4 = vrot.slane %v2401_v48, 1 }
 0x20e   : > { %v1250_v5 = vsel %vm1012_vm12, %v1244_v1, %v1154_v56  ;;  %v1001_v6 = vsel %vm998_vm10, %v994_v2, %v877_v60  ;;  %v1028_v7 = vsel %vm977_vm7, %v931_v33, %v943_v0  ;;  %v1077_v8 = vrot.slane %v2416_v61, 7  ;;  %v2476_v49 = vpop.permute.xlu1 %849  ;;  %v2491_v62 = vpop.permute.xlu0 %846 }
 0x20f   : > { %v1256_v10 = vsel %vm1019_vm13, %v1250_v5, %v1166_v59  ;;  %v1008_v11 = vsel %vm1005_vm11, %v1001_v6, %v889_v25  ;;  %v1034_v12 = vsel %vm984_vm8, %v1028_v7, %v955_v3  ;;  %v1089_v13 = vrot.slane %v2416_v61, 5 }
 0x210   : > { %1271 = vst [vmem:[%s1896_s10 + $0x58] sm:$0xff] %v1256_v10  ;;  %v1015_v14 = vsel %vm1012_vm12, %v1008_v11, %v901_v28  ;;  %v1040_v15 = vsel %vm991_vm9, %v1034_v12, %v967_v4  ;;  %v1101_v16 = vrot.slane %v2416_v61, 3  ;;  %v1113_v17 = vrot.slane %v2416_v61, 1 }
 0x211   : > { %v1022_v18 = vsel %vm1019_vm13, %v1015_v14, %v913_v29  ;;  %v1046_v19 = vsel %vm998_vm10, %v1040_v15, %v931_v33  ;;  %v1179_v20 = vsel %vm977_vm7, %v1077_v8, %v1089_v13  ;;  %v1131_v21 = vrot.slane %v2431_v34, 7 }
 0x212   : > { %1268 = vst [vmem:[%s1896_s10 + $0x40] sm:$0xff] %v1022_v18  ;;  %v1052_v23 = vsel %vm1005_vm11, %v1046_v19, %v943_v0  ;;  %v1185_v38 = vsel %vm984_vm8, %v1179_v20, %v1101_v16  ;;  %v1143_v39 = vrot.slane %v2431_v34, 5  ;;  %v1155_v40 = vrot.slane %v2431_v34, 3  ;;  %v856_v35 = vpop.permute.xlu1 %855  ;;  %v853_v10 = vpop.permute.xlu0 %852 }
 0x213   : > { %v1058_v41 = vsel %vm1012_vm12, %v1052_v23, %v955_v3  ;;  %v1191_v42 = vsel %vm991_vm9, %v1185_v38, %v1113_v17  ;;  %v1167_v43 = vrot.slane %v2431_v34, 1  ;;  %v878_v44 = vrot.slane %v2446_v9, 7 }
 0x214   : > { %v1064_v45 = vsel %vm1019_vm13, %v1058_v41, %v967_v4  ;;  %v1197_v46 = vsel %vm998_vm10, %v1191_v42, %v1077_v8  ;;  %v1221_v47 = vsel %vm977_vm7, %v1131_v21, %v1143_v39  ;;  %v890_v48 = vrot.slane %v2446_v9, 5 }
 0x215   : > { %1269 = vst [vmem:[%s1896_s10 + $0x48] sm:$0xff] %v1064_v45  ;;  %v1203_v50 = vsel %vm1005_vm11, %v1197_v46, %v1089_v13  ;;  %v1227_v51 = vsel %vm984_vm8, %v1221_v47, %v1155_v40  ;;  %v902_v52 = vrot.slane %v2446_v9, 3  ;;  %v914_v53 = vrot.slane %v2446_v9, 1 }
 0x216   : > { %v1209_v54 = vsel %vm1012_vm12, %v1203_v50, %v1101_v16  ;;  %v1233_v55 = vsel %vm991_vm9, %v1227_v51, %v1167_v43  ;;  %v981_v56 = vsel %vm977_vm7, %v878_v44, %v890_v48  ;;  %v932_v57 = vrot.slane %v2461_v22, 7  ;;  %v862_v23 = vpop.permute.xlu1 %861  ;;  %v859_v50 = vpop.permute.xlu0 %858 }
 0x217   : > { %v1215_v58 = vsel %vm1019_vm13, %v1209_v54, %v1113_v17  ;;  %v1239_v59 = vsel %vm998_vm10, %v1233_v55, %v1131_v21  ;;  %v988_v60 = vsel %vm984_vm8, %v981_v56, %v902_v52  ;;  %v944_v61 = vrot.slane %v2461_v22, 5 }
 0x218   : > { %1274 = vst [vmem:[%s1896_s10 + $0x70] sm:$0xff] %v1215_v58  ;;  %v1245_v63 = vsel %vm1005_vm11, %v1239_v59, %v1143_v39  ;;  %v995_v24 = vsel %vm991_vm9, %v988_v60, %v914_v53  ;;  %v956_v25 = vrot.slane %v2461_v22, 3  ;;  %v968_v26 = vrot.slane %v2461_v22, 1 }
 0x219   : > { %v1251_v27 = vsel %vm1012_vm12, %v1245_v63, %v1155_v40  ;;  %v1002_v28 = vsel %vm998_vm10, %v995_v24, %v878_v44  ;;  %v1029_v29 = vsel %vm977_vm7, %v932_v57, %v944_v61  ;;  %v1078_v30 = vrot.slane %v2476_v49, 7 }
 0x21a   : > { %v1257_v31 = vsel %vm1019_vm13, %v1251_v27, %v1167_v43  ;;  %v1009_v32 = vsel %vm1005_vm11, %v1002_v28, %v890_v48  ;;  %v1035_v33 = vsel %vm984_vm8, %v1029_v29, %v956_v25  ;;  %v1090_v34 = vrot.slane %v2476_v49, 5  ;;  %v868_v63 = vpop.permute.xlu1 %867 }
 0x21b   : > { %1275 = vst [vmem:[%s1896_s10 + $0x78] sm:$0xff] %v1257_v31  ;;  %v1016_v36 = vsel %vm1012_vm12, %v1009_v32, %v902_v52  ;;  %v1041_v37 = vsel %vm991_vm9, %v1035_v33, %v968_v26  ;;  %v1102_v0 = vrot.slane %v2476_v49, 3  ;;  %v1114_v1 = vrot.slane %v2476_v49, 1 }
 0x21c   : > { %v1023_v2 = vsel %vm1019_vm13, %v1016_v36, %v914_v53  ;;  %v1047_v3 = vsel %vm998_vm10, %v1041_v37, %v932_v57  ;;  %v1180_v4 = vsel %vm977_vm7, %v1078_v30, %v1090_v34  ;;  %v1132_v5 = vrot.slane %v2491_v62, 7  ;;  %v865_v36 = vpop.permute.xlu0 %864 }
 0x21d   : > { %1272 = vst [vmem:[%s1896_s10 + $0x60] sm:$0xff] %v1023_v2  ;;  %v1053_v6 = vsel %vm1005_vm11, %v1047_v3, %v944_v61  ;;  %v1186_v7 = vsel %vm984_vm8, %v1180_v4, %v1102_v0  ;;  %v1144_v8 = vrot.slane %v2491_v62, 5  ;;  %v1156_v9 = vrot.slane %v2491_v62, 3 }
 0x21e   : > { %v1059_v11 = vsel %vm1012_vm12, %v1053_v6, %v956_v25  ;;  %v1192_v12 = vsel %vm991_vm9, %v1186_v7, %v1114_v1  ;;  %v1168_v13 = vrot.slane %v2491_v62, 1  ;;  %v879_v14 = vrot.slane %v856_v35, 7 }
 0x21f   : > { %v1065_v15 = vsel %vm1019_vm13, %v1059_v11, %v968_v26  ;;  %v1198_v16 = vsel %vm998_vm10, %v1192_v12, %v1078_v30  ;;  %v1222_v17 = vsel %vm977_vm7, %v1132_v5, %v1144_v8  ;;  %v891_v18 = vrot.slane %v856_v35, 5 }
 0x220   : > { %1273 = vst [vmem:[%s1896_s10 + $0x68] sm:$0xff] %v1065_v15  ;;  %v1204_v19 = vsel %vm1005_vm11, %v1198_v16, %v1090_v34  ;;  %v1228_v20 = vsel %vm984_vm8, %v1222_v17, %v1156_v9  ;;  %v903_v21 = vrot.slane %v856_v35, 3  ;;  %v915_v22 = vrot.slane %v856_v35, 1 }
 0x221   : > { %v1210_v38 = vsel %vm1012_vm12, %v1204_v19, %v1102_v0  ;;  %v1234_v39 = vsel %vm991_vm9, %v1228_v20, %v1168_v13  ;;  %v982_v40 = vsel %vm977_vm7, %v879_v14, %v891_v18  ;;  %v933_v41 = vrot.slane %v853_v10, 7 }
 0x222   : > { %v1216_v42 = vsel %vm1019_vm13, %v1210_v38, %v1114_v1  ;;  %v1240_v43 = vsel %vm998_vm10, %v1234_v39, %v1132_v5  ;;  %v989_v44 = vsel %vm984_vm8, %v982_v40, %v903_v21  ;;  %v945_v45 = vrot.slane %v853_v10, 5 }
 0x223   : > { %1278 = vst [vmem:[%s1896_s10 + $0x90] sm:$0xff] %v1216_v42  ;;  %v1246_v46 = vsel %vm1005_vm11, %v1240_v43, %v1144_v8  ;;  %v996_v47 = vsel %vm991_vm9, %v989_v44, %v915_v22  ;;  %v957_v48 = vrot.slane %v853_v10, 3  ;;  %v969_v49 = vrot.slane %v853_v10, 1 }
 0x224   : > { %v1252_v51 = vsel %vm1012_vm12, %v1246_v46, %v1156_v9  ;;  %v1003_v52 = vsel %vm998_vm10, %v996_v47, %v879_v14  ;;  %v1030_v53 = vsel %vm977_vm7, %v933_v41, %v945_v45  ;;  %v1079_v54 = vrot.slane %v862_v23, 7 }
 0x225   : > { %v1258_v55 = vsel %vm1019_vm13, %v1252_v51, %v1168_v13  ;;  %v1010_v56 = vsel %vm1005_vm11, %v1003_v52, %v891_v18  ;;  %v1036_v57 = vsel %vm984_vm8, %v1030_v53, %v957_v48  ;;  %v1091_v58 = vrot.slane %v862_v23, 5 }
 0x226   : > { %1279 = vst [vmem:[%s1896_s10 + $0x98] sm:$0xff] %v1258_v55  ;;  %v1017_v59 = vsel %vm1012_vm12, %v1010_v56, %v903_v21  ;;  %v1042_v60 = vsel %vm991_vm9, %v1036_v57, %v969_v49  ;;  %v1103_v61 = vrot.slane %v862_v23, 3  ;;  %v1115_v62 = vrot.slane %v862_v23, 1 }
 0x227   : > { %v1024_v24 = vsel %vm1019_vm13, %v1017_v59, %v915_v22  ;;  %v1048_v25 = vsel %vm998_vm10, %v1042_v60, %v933_v41  ;;  %v1181_v26 = vsel %vm977_vm7, %v1079_v54, %v1091_v58  ;;  %v1133_v27 = vrot.slane %v859_v50, 7 }
 0x228   : > { %1276 = vst [vmem:[%s1896_s10 + $0x80] sm:$0xff] %v1024_v24  ;;  %v1054_v28 = vsel %vm1005_vm11, %v1048_v25, %v945_v45  ;;  %v1187_v29 = vsel %vm984_vm8, %v1181_v26, %v1103_v61  ;;  %v1145_v30 = vrot.slane %v859_v50, 5  ;;  %v1157_v31 = vrot.slane %v859_v50, 3 }
 0x229   : > { %v1060_v32 = vsel %vm1012_vm12, %v1054_v28, %v957_v48  ;;  %v1193_v33 = vsel %vm991_vm9, %v1187_v29, %v1115_v62  ;;  %v1169_v34 = vrot.slane %v859_v50, 1  ;;  %v880_v35 = vrot.slane %v868_v63, 7 }
 0x22a   : > { %v1066_v37 = vsel %vm1019_vm13, %v1060_v32, %v969_v49  ;;  %v1199_v0 = vsel %vm998_vm10, %v1193_v33, %v1079_v54  ;;  %v1223_v1 = vsel %vm977_vm7, %v1133_v27, %v1145_v30  ;;  %v892_v2 = vrot.slane %v868_v63, 5 }
 0x22b   : > { %1277 = vst [vmem:[%s1896_s10 + $0x88] sm:$0xff] %v1066_v37  ;;  %v1205_v3 = vsel %vm1005_vm11, %v1199_v0, %v1091_v58  ;;  %v1229_v4 = vsel %vm984_vm8, %v1223_v1, %v1157_v31  ;;  %v904_v5 = vrot.slane %v868_v63, 3  ;;  %v916_v6 = vrot.slane %v868_v63, 1 }
 0x22c   : > { %v1211_v7 = vsel %vm1012_vm12, %v1205_v3, %v1103_v61  ;;  %v1235_v8 = vsel %vm991_vm9, %v1229_v4, %v1169_v34  ;;  %v983_v9 = vsel %vm977_vm7, %v880_v35, %v892_v2  ;;  %v934_v10 = vrot.slane %v865_v36, 7 }
 0x22d   : > { %v1217_v11 = vsel %vm1019_vm13, %v1211_v7, %v1115_v62  ;;  %v1241_v12 = vsel %vm998_vm10, %v1235_v8, %v1133_v27  ;;  %v990_v13 = vsel %vm984_vm8, %v983_v9, %v904_v5  ;;  %v946_v14 = vrot.slane %v865_v36, 5 }
 0x22e   : > { %1282 = vst [vmem:[%s1896_s10 + $0xb0] sm:$0xff] %v1217_v11  ;;  %v1247_v15 = vsel %vm1005_vm11, %v1241_v12, %v1145_v30  ;;  %v997_v16 = vsel %vm991_vm9, %v990_v13, %v916_v6  ;;  %v958_v17 = vrot.slane %v865_v36, 3  ;;  %v970_v20 = vrot.slane %v865_v36, 1 }
 0x22f   : > { %v1253_v18 = vsel %vm1012_vm12, %v1247_v15, %v1157_v31  ;;  %v1004_v19 = vsel %vm998_vm10, %v997_v16, %v880_v35  ;;  %v1031_v21 = vsel %vm977_vm7, %v934_v10, %v946_v14 }
 0x230   : > { %v1259_v22 = vsel %vm1019_vm13, %v1253_v18, %v1169_v34  ;;  %v1011_v23 = vsel %vm1005_vm11, %v1004_v19, %v892_v2  ;;  %v1037_v38 = vsel %vm984_vm8, %v1031_v21, %v958_v17 }
 0x231   : > { %1283 = vst [vmem:[%s1896_s10 + $0xb8] sm:$0xff] %v1259_v22  ;;  %v1018_v39 = vsel %vm1012_vm12, %v1011_v23, %v904_v5  ;;  %v1043_v40 = vsel %vm991_vm9, %v1037_v38, %v970_v20 }
 0x232   : > { %v1025_v41 = vsel %vm1019_vm13, %v1018_v39, %v916_v6  ;;  %v1049_v42 = vsel %vm998_vm10, %v1043_v40, %v934_v10 }
 0x233   : > { %1280 = vst [vmem:[%s1896_s10 + $0xa0] sm:$0xff] %v1025_v41  ;;  %v1055_v43 = vsel %vm1005_vm11, %v1049_v42, %v946_v14 }
 0x234   : > { %v1061_v44 = vsel %vm1012_vm12, %v1055_v43, %v958_v17 }
 0x235   : > { %v1067_v45 = vsel %vm1019_vm13, %v1061_v44, %v970_v20 }
 0x236   : > { %1281 = vst [vmem:[%s1896_s10 + $0xa8] sm:$0xff] %v1067_v45 }
 0x237 PF: > { %s1285_s11 = scalar_lea.sflag [#allocation6], %s193_s6 }
 0x238   : > { %s1435_s18 = sshll.u32 %s1633_s0, 9  ;;  %s1317_s22 = sshll.u32 %s1896_s10, 4  ;;  %s1318_s22 = int_to_ptr.vmem [resolvable:$true] %s1317_s22 }
 0x239   : > { %s1300_s4 = scalar_lea.hbm %s2641_s2, %s1435_s18  ;;  %s1650_s5 = smov 512  }
 0x23a   : > { %1448 = sst [smem:[#allocation11]] (%p1762_p1), %s1650_s5  ;;  %s1651_s3 = smov 1024  }
 0x23b   : > { %1449 = sst [smem:[#allocation11 + $0x1]] (%p1762_p1), %s1651_s3  ;;  %s1652_s27 = smov 4  }
 0x23c   : > { %1450 = sst [smem:[#allocation11 + $0x2]] (%p1762_p1), %s1652_s27  ;;  %s1653_s8 = smov 128  }
 0x23d   : > { %1451 = sst [smem:[#allocation11 + $0x3]] (%p1762_p1), %s1653_s8  ;;  %s1654_s0 = smov 8  }
 0x23e   : > { %1452 = sst [smem:[#allocation11 + $0x4]] (%p1762_p1), %s1653_s8  ;;  %s1655_s29 = smov [#allocation10]  }
 0x23f   : > { %1453 = sst [smem:[#allocation11 + $0x5]] (%p1762_p1), %s1654_s0  ;;  %s1656_s6 = smov 0  }
 0x240   : > { %1454 = dma.general (%p1762_p1), %s1318_s22, 3072, %s1300_s4, %s1285_s11, %s1655_s29, [#allocation11], %s1656_s6, 0  }
 0x241 PF: > { %s1345_s16 = sand.u32 1, %s1609_s19   ;;  %p1457_p7 = pnand %p1422_p5, %p1768_p4 }
 0x242   : > { %s1346_s7 = scalar_lea.sflag [#allocation6], %s1345_s16 }
 0x243   : > { %1604 = dma.done.wait (!%p1457_p7), %s1346_s7, 3072  }
 0x244   : > { %1606 = vsyncadd (!%p1457_p7), %s1346_s7, 4294964224  ;;  %s22_s26 = sadd.s32 1, %s1641_s26   ;;  %s2649_s14 = sld [smem:[#allocation16_spill]] }
 0x245   : > { %p19_p8 = scmp.ge.s32.totalorder %s22_s26, 4   ;;  %s2650_s19 = smov %s1613_s20 }
 0x246   : > { %s2651_s20 = smov %s1617_s21  ;;  %s2652_s21 = smov %s1757_s12 }
 0x247   : > { %s2653_s22 = smov %s1625_s23  ;;  %s2654_s23 = smov %s1629_s24 }
 0x248   : > { %s2655_s24 = smov %s1760_s13  ;;  %s2656_s0 = smov %s1637_s25 }
 0x249   :  { %21 = sbr.rel (!%p19_p8) target bundleno = 20 (0x14), region = 95 }
 0x24a   : > { %s2657_s25 = smov %s2649_s14 }
 0x250   :  { %1351 = vsyncpa [#allocation5], 1 }
 0x251   :  { %1353 = vsyncpa [#allocation5 + $0x1], 1 }
 0x252   :  { %1354 = vsyncpa [#allocation6], 1 }
 0x253   :  { %1356 = vsyncpa [#allocation6 + $0x1], 1 }

</bundles_post_ra>
